<compile_context>
chip_gen: v7x
topology: tpu7x:2x2x1
jax: 0.10.0
libtpu: 0.0.40
codegen_flags: <defaults>
</compile_context>

<pallas_src>
import functools
import math

import jax
import jax.numpy as jnp
from jax import lax
from jax.experimental import pallas as pl
from jax.experimental.pallas import tpu as pltpu  # noqa: F401  (TPU backend)

# --- model config (consistent with the module's __init__) ---
VOCAB = 50
VOCAB_PAD = 56        # vocab rounded up to a sublane multiple for the packed blob / one-hot matmul
EMBED = 32            # embedding_dims
HEADS = 4
HEAD_DIM = EMBED // HEADS
LAYERS = 2            # num_of_layers
FFN_EXP = 2           # forward_expansion
FFN = EMBED * FFN_EXP
MAX_LEN = 16
EPS = 1e-5            # layer_norm_eps

BATCH = 2
SEQ = 8

LANES = 128           # packed weight blob width (one vreg lane span)


# ------------------------- packed weight blob layout --------------------------
def _build_layout():
    """Static (row_offset, rows, cols) for every sub-tensor; offsets 8-row aligned."""
    layout = {}
    off = 0

    def add(name, rows, cols):
        nonlocal off
        layout[name] = (off, rows, cols)
        off += ((rows + 7) // 8) * 8

    add('emb', VOCAB_PAD, EMBED)
    add('pos', MAX_LEN, EMBED)
    add('lnw', 1, EMBED)
    add('lnb', 1, EMBED)
    for l in range(LAYERS):
        add(f'wqkv{l}', EMBED, 3 * EMBED)
        add(f'bqkv{l}', 1, 3 * EMBED)
        add(f'wfc{l}', EMBED, EMBED)
        add(f'bfc{l}', 1, EMBED)
        add(f'ln1w{l}', 1, EMBED)
        add(f'ln1b{l}', 1, EMBED)
        add(f'w1{l}', EMBED, FFN)
        add(f'b1{l}', 1, FFN)
        add(f'w2{l}', FFN, EMBED)
        add(f'b2{l}', 1, EMBED)
        add(f'ln2w{l}', 1, EMBED)
        add(f'ln2b{l}', 1, EMBED)
    return layout, off


LAYOUT, BLOB_ROWS = _build_layout()     # BLOB_ROWS = 536 -> blob is (536, 128) f32 (~268 KiB)


# ----------------------------- in-kernel helpers -----------------------------
def _erf(x):
    # Abramowitz & Stegun 7.1.26 rational approximation, |error| < 1.5e-7.
    a1, a2, a3, a4, a5 = (0.254829592, -0.284496736, 1.421413741,
                          -1.453152027, 1.061405429)
    p = 0.3275911
    sgn = jnp.where(x >= 0.0, 1.0, -1.0)
    ax = jnp.abs(x)
    t = 1.0 / (1.0 + p * ax)
    poly = ((((a5 * t + a4) * t + a3) * t + a2) * t + a1) * t
    return sgn * (1.0 - poly * jnp.exp(-ax * ax))


def _gelu(x):
    # exact (erf-based) GELU == torch.nn.GELU() default
    return 0.5 * x * (1.0 + _erf(x * (1.0 / math.sqrt(2.0))))


def _layernorm(x, w, b):
    mean = jnp.mean(x, axis=-1, keepdims=True)
    var = jnp.mean(jnp.square(x - mean), axis=-1, keepdims=True)
    return (x - mean) * lax.rsqrt(var + EPS) * w + b


def _slab(ref, name):
    """Static slice of the packed weight blob (zero-cost ref view + load)."""
    off, rows, cols = LAYOUT[name]
    return ref[off:off + rows, 0:cols]


# ---------------------------------- kernel -----------------------------------
def gpt_kernel(tok_ref, w_ref, out_ref, *, batch, seq):
    """Entire GPT forward for all batch elements in one program (grid=())."""
    bs = batch * seq

    # ---- embedding gather as a one-hot matmul: tokens (BS,1) -> x (BS, E) ----
    tok = tok_ref[...]                                              # (BS, 1) int32
    vocab_ids = lax.broadcasted_iota(jnp.int32, (bs, VOCAB_PAD), 1)
    onehot = (tok == vocab_ids).astype(jnp.float32)                 # (BS, VOCAB_PAD)
    x = jnp.dot(onehot, _slab(w_ref, 'emb'), preferred_element_type=jnp.float32)

    # positional embeddings (rows are ordered (b, s); tile pos over batch)
    poff, _, _ = LAYOUT['pos']
    pos_s = w_ref[poff:poff + seq, 0:EMBED]                         # (S, E)
    x = x + jnp.concatenate([pos_s] * batch, axis=0)                # dropout = identity

    # ---- hoisted constants: additive causal bias (shared across layers/heads) ----
    row = lax.broadcasted_iota(jnp.int32, (seq, seq), 0)
    col = lax.broadcasted_iota(jnp.int32, (seq, seq), 1)
    bias2d = jnp.where(row >= col, 0.0, -1e20).astype(jnp.float32)  # (S, S)
    bias = jnp.broadcast_to(bias2d, (HEADS * batch, seq, seq))      # hoisted broadcast
    scale = jnp.float32(1.0 / math.sqrt(HEAD_DIM))

    for l in range(LAYERS):
        # fused QKV projection: one (BS,E)@(E,3E) dot, columns ordered [q|k|v] x (head, dh)
        qkv = jnp.dot(x, _slab(w_ref, f'wqkv{l}'),
                      preferred_element_type=jnp.float32) + _slab(w_ref, f'bqkv{l}')

        # gather per-head q/k/v into one collapsed (H*B, S, Dh) batch axis
        q_list, k_list, v_list = [], [], []
        for h in range(HEADS):
            lo = h * HEAD_DIM
            q_list.append(qkv[:, lo:lo + HEAD_DIM].reshape(batch, seq, HEAD_DIM))
            k_list.append(qkv[:, EMBED + lo:EMBED + lo + HEAD_DIM]
                          .reshape(batch, seq, HEAD_DIM))
            v_list.append(qkv[:, 2 * EMBED + lo:2 * EMBED + lo + HEAD_DIM]
                          .reshape(batch, seq, HEAD_DIM))
        q = jnp.concatenate(q_list, axis=0)        # (H*B, S, Dh), z = h*B + b
        k = jnp.concatenate(k_list, axis=0)
        v = jnp.concatenate(v_list, axis=0)

        # one batched score einsum + one batched attention*V einsum for all heads/batches
        s = jnp.einsum('zqd,zkd->zqk', q, k, preferred_element_type=jnp.float32)
        s = (s + bias) * scale                     # masked_fill(-1e20) BEFORE /sqrt(Dh), as in torch
        s = s - jnp.max(s, axis=-1, keepdims=True)
        p = jnp.exp(s)
        att = p * pl.reciprocal(jnp.sum(p, axis=-1, keepdims=True), approx=True)
        o = jnp.einsum('zqk,zkd->zqd', att, v, preferred_element_type=jnp.float32)

        # back to (BS, E) with heads in lane order (leading-axis slices + lane concat)
        attn = jnp.concatenate(
            [o[h * batch:(h + 1) * batch].reshape(bs, HEAD_DIM) for h in range(HEADS)],
            axis=-1)

        attn = jnp.dot(attn, _slab(w_ref, f'wfc{l}'),
                       preferred_element_type=jnp.float32) + _slab(w_ref, f'bfc{l}')

        # residual + LayerNorm1 (dropout = identity)
        add1 = _layernorm(attn + x, _slab(w_ref, f'ln1w{l}'), _slab(w_ref, f'ln1b{l}'))

        # feed-forward: Linear -> GELU -> Linear
        h1 = jnp.dot(add1, _slab(w_ref, f'w1{l}'),
                     preferred_element_type=jnp.float32) + _slab(w_ref, f'b1{l}')
        h1 = _gelu(h1)
        ff = jnp.dot(h1, _slab(w_ref, f'w2{l}'),
                     preferred_element_type=jnp.float32) + _slab(w_ref, f'b2{l}')

        # residual + LayerNorm2 (dropout = identity)
        x = _layernorm(ff + add1, _slab(w_ref, f'ln2w{l}'), _slab(w_ref, f'ln2b{l}'))

    # final LayerNorm (the module's self.fc output is discarded by forward(); skipped)
    out_ref[...] = _layernorm(x, _slab(w_ref, 'lnw'), _slab(w_ref, 'lnb'))


# --------------------------------- wrappers ----------------------------------
def init_params(key):
    std = 0.02
    k_emb, k_blocks = jax.random.split(key)
    params = {
        'embedding': (jax.random.normal(k_emb, (VOCAB, EMBED)) * std).astype(jnp.float32),
        'pos': jnp.zeros((1, MAX_LEN, EMBED), jnp.float32),   # plain Parameter -> zeros
        'ln_w': jnp.ones((1, EMBED), jnp.float32),
        'ln_b': jnp.zeros((1, EMBED), jnp.float32),
    }
    blocks = []
    bkeys = jax.random.split(k_blocks, LAYERS)
    for l in range(LAYERS):
        ks = jax.random.split(bkeys[l], 6)
        blk = dict(
            # Linear weights ~ N(0, 0.02); stored pre-transposed as (in, out)
            wq=jax.random.normal(ks[0], (HEAD_DIM, HEAD_DIM)) * std,
            bq=jnp.zeros((1, HEAD_DIM)),
            wk=jax.random.normal(ks[1], (HEAD_DIM, HEAD_DIM)) * std,
            bk=jnp.zeros((1, HEAD_DIM)),
            wv=jax.random.normal(ks[2], (HEAD_DIM, HEAD_DIM)) * std,
            bv=jnp.zeros((1, HEAD_DIM)),
            wfc=jax.random.normal(ks[3], (EMBED, EMBED)) * std,
            bfc=jnp.zeros((1, EMBED)),
            ln1w=jnp.ones((1, EMBED)), ln1b=jnp.zeros((1, EMBED)),
            w1=jax.random.normal(ks[4], (EMBED, FFN)) * std,
            b1=jnp.zeros((1, FFN)),
            w2=jax.random.normal(ks[5], (FFN, EMBED)) * std,
            b2=jnp.zeros((1, EMBED)),
            ln2w=jnp.ones((1, EMBED)), ln2b=jnp.zeros((1, EMBED)),
        )
        blocks.append({k: v.astype(jnp.float32) for k, v in blk.items()})
    params['blocks'] = blocks
    # NOTE: the module also owns self.fc (E -> vocab) whose output forward() discards.
    return params


def pack_params(params):
    """Pack every weight into ONE (BLOB_ROWS, 128) f32 buffer (single HBM->VMEM DMA)."""
    blob = jnp.zeros((BLOB_ROWS, LANES), jnp.float32)

    def put(b, name, arr):
        off, _, _ = LAYOUT[name]
        arr = jnp.asarray(arr, jnp.float32)
        return b.at[off:off + arr.shape[0], 0:arr.shape[1]].set(arr)

    blob = put(blob, 'emb', params['embedding'])     # rows 50..55 stay zero (padding)
    blob = put(blob, 'pos', params['pos'][0])
    blob = put(blob, 'lnw', params['ln_w'])
    blob = put(blob, 'lnb', params['ln_b'])

    eye_h = jnp.eye(HEADS, dtype=jnp.float32)
    for l, blk in enumerate(params['blocks']):
        # per-head-shared (Dh,Dh) q/k/v Linears -> block-diagonal (E,E), fused into (E, 3E)
        wq_bd = jnp.kron(eye_h, blk['wq'])
        wk_bd = jnp.kron(eye_h, blk['wk'])
        wv_bd = jnp.kron(eye_h, blk['wv'])
        wqkv = jnp.concatenate([wq_bd, wk_bd, wv_bd], axis=1)
        bqkv = jnp.concatenate([jnp.tile(blk['bq'], (1, HEADS)),
                                jnp.tile(blk['bk'], (1, HEADS)),
                                jnp.tile(blk['bv'], (1, HEADS))], axis=1)
        blob = put(blob, f'wqkv{l}', wqkv)
        blob = put(blob, f'bqkv{l}', bqkv)
        blob = put(blob, f'wfc{l}', blk['wfc'])
        blob = put(blob, f'bfc{l}', blk['bfc'])
        blob = put(blob, f'ln1w{l}', blk['ln1w'])
        blob = put(blob, f'ln1b{l}', blk['ln1b'])
        blob = put(blob, f'w1{l}', blk['w1'])
        blob = put(blob, f'b1{l}', blk['b1'])
        blob = put(blob, f'w2{l}', blk['w2'])
        blob = put(blob, f'b2{l}', blk['b2'])
        blob = put(blob, f'ln2w{l}', blk['ln2w'])
        blob = put(blob, f'ln2b{l}', blk['ln2b'])
    return blob


@jax.jit
def gpt_forward(tokens, wblob):
    """Matches GPT.forward: returns post-final-LayerNorm hidden states (B, S, E)."""
    B, S = tokens.shape
    tok = tokens.reshape(B * S, 1).astype(jnp.int32)
    kernel = functools.partial(gpt_kernel, batch=B, seq=S)
    out = pl.pallas_call(
        kernel,
        out_shape=jax.ShapeDtypeStruct((B * S, EMBED), jnp.float32),
        # grid=() : single program on one TensorCore; 2 input DMAs (tokens, packed blob),
        # 1 output DMA. Total resident data ~300 KiB -> fits every TPU generation's VMEM.
    )(tok, wblob)
    return out.reshape(B, S, EMBED)


# ------------------------- pure-JAX reference (check) -------------------------
def gpt_reference(tokens, params):
    with jax.default_matmul_precision("float32"):
        B, S = tokens.shape
        x = params['embedding'][tokens] + params['pos'][:, :S, :]
        mask = jnp.tril(jnp.ones((S, S), dtype=bool))

        def ln(v, w, b):
            m = jnp.mean(v, axis=-1, keepdims=True)
            var = jnp.mean(jnp.square(v - m), axis=-1, keepdims=True)
            return (v - m) * lax.rsqrt(var + EPS) * w[0] + b[0]

        for blk in params['blocks']:
            xh = x.reshape(B, S, HEADS, HEAD_DIM)
            q = xh @ blk['wq'] + blk['bq'][0]
            k = xh @ blk['wk'] + blk['bk'][0]
            v = xh @ blk['wv'] + blk['bv'][0]
            score = jnp.einsum('bqhd,bkhd->bhqk', q, k)
            score = jnp.where(mask, score, -1e20)
            att = jax.nn.softmax(score / math.sqrt(HEAD_DIM), axis=-1)
            out = jnp.einsum('bhqk,bkhd->bqhd', att, v).reshape(B, S, EMBED)
            out = out @ blk['wfc'] + blk['bfc'][0]
            add = ln(out + x, blk['ln1w'], blk['ln1b'])
            ff = jax.nn.gelu(add @ blk['w1'] + blk['b1'][0], approximate=False)
            ff = ff @ blk['w2'] + blk['b2'][0]
            x = ln(ff + add, blk['ln2w'], blk['ln2b'])
        return ln(x, params['ln_w'], params['ln_b'])


if __name__ == "__main__":
    key = jax.random.PRNGKey(0)
    k_tok, k_par = jax.random.split(key)
    tokens = jax.random.randint(k_tok, (BATCH, SEQ), 0, VOCAB, dtype=jnp.int32)
    params = init_params(k_par)
    wblob = pack_params(params)

    out = gpt_forward(tokens, wblob)
    jax.block_until_ready(out)

    assert out.shape == (BATCH, SEQ, EMBED) and out.dtype == jnp.float32
    assert bool(jnp.all(jnp.isfinite(out)))
    # structural-correctness check vs pure-JAX reference (loose tol: MXU pass precision)
    ref = gpt_reference(tokens, params)
    assert bool(jnp.allclose(out, ref, atol=2e-2, rtol=2e-2))
    print("KERNEL_OK")
</pallas_src>

<mosaic_0001>
module attributes {stable_mosaic.version = 11 : i64} {
  func.func @gpt_kernel(%arg0: memref<16x1xi32, #tpu.memory_space<vmem>>, %arg1: memref<536x128xf32, #tpu.memory_space<vmem>>, %arg2: memref<16x32xf32, #tpu.memory_space<vmem>>) attributes {dimension_semantics = [], scalar_prefetch = 0 : i64, scratch_operands = 0 : i64, tpu.core_type = #tpu.core_type<tc>} {
    %c0 = arith.constant 0 : index
    %c0_0 = arith.constant 0 : index
    %0 = vector.load %arg0[%c0, %c0_0] : memref<16x1xi32, #tpu.memory_space<vmem>>, vector<16x1xi32>
    %1 = tpu.iota {dimensions = array<i32: 1>} : vector<16x56xi32>
    %2 = vector.broadcast %0 : vector<16x1xi32> to vector<16x56xi32>
    %3 = arith.cmpi eq, %2, %1 : vector<16x56xi32>
    %4 = arith.extui %3 : vector<16x56xi1> to vector<16x56xi32>
    %5 = arith.sitofp %4 : vector<16x56xi32> to vector<16x56xf32>
    %c0_1 = arith.constant 0 : index
    %c0_2 = arith.constant 0 : index
    %6 = vector.load %arg1[%c0_1, %c0_2] : memref<536x128xf32, #tpu.memory_space<vmem>>, vector<56x32xf32>
    %cst = arith.constant dense<0.000000e+00> : vector<16x32xf32>
    %7 = tpu.matmul %5, %6, %cst {dimension_numbers = #tpu.dot_dimension_numbers<[1], [0], [0], [1], [0, 0, 1, 1], [], []>} : vector<16x56xf32>, vector<56x32xf32>, vector<16x32xf32> -> vector<16x32xf32>
    %c56 = arith.constant 56 : index
    %c0_3 = arith.constant 0 : index
    %8 = vector.load %arg1[%c56, %c0_3] : memref<536x128xf32, #tpu.memory_space<vmem>>, vector<8x32xf32>
    %9 = tpu.concatenate %8, %8 in 0 : vector<8x32xf32>, vector<8x32xf32> -> vector<16x32xf32>
    %10 = arith.addf %7, %9 : vector<16x32xf32>
    %11 = tpu.iota {dimensions = array<i32: 0>} : vector<8x8xi32>
    %12 = tpu.iota {dimensions = array<i32: 1>} : vector<8x8xi32>
    %13 = arith.cmpi sge, %11, %12 : vector<8x8xi32>
    %cst_4 = arith.constant 0.000000e+00 : f32
    %cst_5 = arith.constant -1.000000e+20 : f32
    %14 = vector.broadcast %cst_4 : f32 to vector<8x8xf32>
    %15 = vector.broadcast %cst_5 : f32 to vector<8x8xf32>
    %16 = arith.select %13, %14, %15 : vector<8x8xi1>, vector<8x8xf32>
    %17 = vector.shape_cast %16 : vector<8x8xf32> to vector<1x8x8xf32>
    %18 = vector.broadcast %17 : vector<1x8x8xf32> to vector<8x8x8xf32>
    %c88 = arith.constant 88 : index
    %c0_6 = arith.constant 0 : index
    %19 = vector.load %arg1[%c88, %c0_6] : memref<536x128xf32, #tpu.memory_space<vmem>>, vector<32x96xf32>
    %cst_7 = arith.constant dense<0.000000e+00> : vector<16x96xf32>
    %20 = tpu.matmul %10, %19, %cst_7 {dimension_numbers = #tpu.dot_dimension_numbers<[1], [0], [0], [1], [0, 0, 1, 1], [], []>} : vector<16x32xf32>, vector<32x96xf32>, vector<16x96xf32> -> vector<16x96xf32>
    %c120 = arith.constant 120 : index
    %c0_8 = arith.constant 0 : index
    %21 = vector.load %arg1[%c120, %c0_8] : memref<536x128xf32, #tpu.memory_space<vmem>>, vector<1x96xf32>
    %22 = vector.broadcast %21 : vector<1x96xf32> to vector<16x96xf32>
    %23 = arith.addf %20, %22 : vector<16x96xf32>
    %24 = vector.extract_strided_slice %23 {offsets = [0, 0], sizes = [16, 8], strides = [1, 1]} : vector<16x96xf32> to vector<16x8xf32>
    %25 = vector.shape_cast %24 : vector<16x8xf32> to vector<2x8x8xf32>
    %26 = vector.extract_strided_slice %23 {offsets = [0, 32], sizes = [16, 8], strides = [1, 1]} : vector<16x96xf32> to vector<16x8xf32>
    %27 = vector.shape_cast %26 : vector<16x8xf32> to vector<2x8x8xf32>
    %28 = vector.extract_strided_slice %23 {offsets = [0, 64], sizes = [16, 8], strides = [1, 1]} : vector<16x96xf32> to vector<16x8xf32>
    %29 = vector.shape_cast %28 : vector<16x8xf32> to vector<2x8x8xf32>
    %30 = vector.extract_strided_slice %23 {offsets = [0, 8], sizes = [16, 8], strides = [1, 1]} : vector<16x96xf32> to vector<16x8xf32>
    %31 = vector.shape_cast %30 : vector<16x8xf32> to vector<2x8x8xf32>
    %32 = vector.extract_strided_slice %23 {offsets = [0, 40], sizes = [16, 8], strides = [1, 1]} : vector<16x96xf32> to vector<16x8xf32>
    %33 = vector.shape_cast %32 : vector<16x8xf32> to vector<2x8x8xf32>
    %34 = vector.extract_strided_slice %23 {offsets = [0, 72], sizes = [16, 8], strides = [1, 1]} : vector<16x96xf32> to vector<16x8xf32>
    %35 = vector.shape_cast %34 : vector<16x8xf32> to vector<2x8x8xf32>
    %36 = vector.extract_strided_slice %23 {offsets = [0, 16], sizes = [16, 8], strides = [1, 1]} : vector<16x96xf32> to vector<16x8xf32>
    %37 = vector.shape_cast %36 : vector<16x8xf32> to vector<2x8x8xf32>
    %38 = vector.extract_strided_slice %23 {offsets = [0, 48], sizes = [16, 8], strides = [1, 1]} : vector<16x96xf32> to vector<16x8xf32>
    %39 = vector.shape_cast %38 : vector<16x8xf32> to vector<2x8x8xf32>
    %40 = vector.extract_strided_slice %23 {offsets = [0, 80], sizes = [16, 8], strides = [1, 1]} : vector<16x96xf32> to vector<16x8xf32>
    %41 = vector.shape_cast %40 : vector<16x8xf32> to vector<2x8x8xf32>
    %42 = vector.extract_strided_slice %23 {offsets = [0, 24], sizes = [16, 8], strides = [1, 1]} : vector<16x96xf32> to vector<16x8xf32>
    %43 = vector.shape_cast %42 : vector<16x8xf32> to vector<2x8x8xf32>
    %44 = vector.extract_strided_slice %23 {offsets = [0, 56], sizes = [16, 8], strides = [1, 1]} : vector<16x96xf32> to vector<16x8xf32>
    %45 = vector.shape_cast %44 : vector<16x8xf32> to vector<2x8x8xf32>
    %46 = vector.extract_strided_slice %23 {offsets = [0, 88], sizes = [16, 8], strides = [1, 1]} : vector<16x96xf32> to vector<16x8xf32>
    %47 = vector.shape_cast %46 : vector<16x8xf32> to vector<2x8x8xf32>
    %48 = tpu.concatenate %25, %31, %37, %43 in 0 : vector<2x8x8xf32>, vector<2x8x8xf32>, vector<2x8x8xf32>, vector<2x8x8xf32> -> vector<8x8x8xf32>
    %49 = tpu.concatenate %27, %33, %39, %45 in 0 : vector<2x8x8xf32>, vector<2x8x8xf32>, vector<2x8x8xf32>, vector<2x8x8xf32> -> vector<8x8x8xf32>
    %50 = tpu.concatenate %29, %35, %41, %47 in 0 : vector<2x8x8xf32>, vector<2x8x8xf32>, vector<2x8x8xf32>, vector<2x8x8xf32> -> vector<8x8x8xf32>
    "tpu.trace_start"() <{level = 10 : i32, message = "zqd,zkd->zqk"}> : () -> ()
    %cst_9 = arith.constant dense<0.000000e+00> : vector<8x8x8xf32>
    %51 = tpu.matmul %48, %49, %cst_9 {dimension_numbers = #tpu.dot_dimension_numbers<[2], [2], [1], [1], [0, 0, 0, 1, 1, 1], [0], [0]>} : vector<8x8x8xf32>, vector<8x8x8xf32>, vector<8x8x8xf32> -> vector<8x8x8xf32>
    "tpu.trace_stop"() : () -> ()
    %52 = arith.addf %51, %18 : vector<8x8x8xf32>
    %cst_10 = arith.constant 0.353553385 : f32
    %53 = vector.broadcast %cst_10 : f32 to vector<8x8x8xf32>
    %54 = arith.mulf %52, %53 : vector<8x8x8xf32>
    %cst_11 = arith.constant dense<0xFF800000> : vector<8x8xf32>
    %55 = vector.multi_reduction <maximumf>, %54, %cst_11 [2] : vector<8x8x8xf32> to vector<8x8xf32>
    %56 = vector.shape_cast %55 : vector<8x8xf32> to vector<8x8x1xf32>
    %57 = vector.broadcast %56 : vector<8x8x1xf32> to vector<8x8x8xf32>
    %58 = arith.subf %54, %57 : vector<8x8x8xf32>
    %59 = math.exp %58 : vector<8x8x8xf32>
    %cst_12 = arith.constant dense<0.000000e+00> : vector<8x8xf32>
    %60 = vector.multi_reduction <add>, %59, %cst_12 [2] : vector<8x8x8xf32> to vector<8x8xf32>
    %61 = vector.shape_cast %60 : vector<8x8xf32> to vector<8x8x1xf32>
    %62 = tpu.reciprocal %61 {approx = true} : vector<8x8x1xf32> -> vector<8x8x1xf32>
    %63 = vector.broadcast %62 : vector<8x8x1xf32> to vector<8x8x8xf32>
    %64 = arith.mulf %59, %63 : vector<8x8x8xf32>
    "tpu.trace_start"() <{level = 10 : i32, message = "zqk,zkd->zqd"}> : () -> ()
    %cst_13 = arith.constant dense<0.000000e+00> : vector<8x8x8xf32>
    %65 = tpu.matmul %64, %50, %cst_13 {dimension_numbers = #tpu.dot_dimension_numbers<[2], [1], [1], [2], [0, 0, 0, 1, 1, 2], [0], [0]>} : vector<8x8x8xf32>, vector<8x8x8xf32>, vector<8x8x8xf32> -> vector<8x8x8xf32>
    "tpu.trace_stop"() : () -> ()
    %66 = vector.extract_strided_slice %65 {offsets = [0, 0, 0], sizes = [2, 8, 8], strides = [1, 1, 1]} : vector<8x8x8xf32> to vector<2x8x8xf32>
    %67 = vector.shape_cast %66 : vector<2x8x8xf32> to vector<16x8xf32>
    %68 = vector.extract_strided_slice %65 {offsets = [2, 0, 0], sizes = [2, 8, 8], strides = [1, 1, 1]} : vector<8x8x8xf32> to vector<2x8x8xf32>
    %69 = vector.shape_cast %68 : vector<2x8x8xf32> to vector<16x8xf32>
    %70 = vector.extract_strided_slice %65 {offsets = [4, 0, 0], sizes = [2, 8, 8], strides = [1, 1, 1]} : vector<8x8x8xf32> to vector<2x8x8xf32>
    %71 = vector.shape_cast %70 : vector<2x8x8xf32> to vector<16x8xf32>
    %72 = vector.extract_strided_slice %65 {offsets = [6, 0, 0], sizes = [2, 8, 8], strides = [1, 1, 1]} : vector<8x8x8xf32> to vector<2x8x8xf32>
    %73 = vector.shape_cast %72 : vector<2x8x8xf32> to vector<16x8xf32>
    %74 = tpu.concatenate %67, %69, %71, %73 in 1 : vector<16x8xf32>, vector<16x8xf32>, vector<16x8xf32>, vector<16x8xf32> -> vector<16x32xf32>
    %c128 = arith.constant 128 : index
    %c0_14 = arith.constant 0 : index
    %75 = vector.load %arg1[%c128, %c0_14] : memref<536x128xf32, #tpu.memory_space<vmem>>, vector<32x32xf32>
    %cst_15 = arith.constant dense<0.000000e+00> : vector<16x32xf32>
    %76 = tpu.matmul %74, %75, %cst_15 {dimension_numbers = #tpu.dot_dimension_numbers<[1], [0], [0], [1], [0, 0, 1, 1], [], []>} : vector<16x32xf32>, vector<32x32xf32>, vector<16x32xf32> -> vector<16x32xf32>
    %c160 = arith.constant 160 : index
    %c0_16 = arith.constant 0 : index
    %77 = vector.load %arg1[%c160, %c0_16] : memref<536x128xf32, #tpu.memory_space<vmem>>, vector<1x32xf32>
    %78 = vector.broadcast %77 : vector<1x32xf32> to vector<16x32xf32>
    %79 = arith.addf %76, %78 : vector<16x32xf32>
    %80 = arith.addf %79, %10 : vector<16x32xf32>
    %c168 = arith.constant 168 : index
    %c0_17 = arith.constant 0 : index
    %81 = vector.load %arg1[%c168, %c0_17] : memref<536x128xf32, #tpu.memory_space<vmem>>, vector<1x32xf32>
    %c176 = arith.constant 176 : index
    %c0_18 = arith.constant 0 : index
    %82 = vector.load %arg1[%c176, %c0_18] : memref<536x128xf32, #tpu.memory_space<vmem>>, vector<1x32xf32>
    %cst_19 = arith.constant dense<0.000000e+00> : vector<16xf32>
    %83 = vector.multi_reduction <add>, %80, %cst_19 [1] : vector<16x32xf32> to vector<16xf32>
    %84 = vector.shape_cast %83 : vector<16xf32> to vector<16x1xf32>
    %cst_20 = arith.constant 3.200000e+01 : f32
    %85 = vector.broadcast %cst_20 : f32 to vector<16x1xf32>
    %86 = arith.divf %84, %85 : vector<16x1xf32>
    %87 = vector.broadcast %86 : vector<16x1xf32> to vector<16x32xf32>
    %88 = arith.subf %80, %87 : vector<16x32xf32>
    %89 = arith.mulf %88, %88 : vector<16x32xf32>
    %cst_21 = arith.constant dense<0.000000e+00> : vector<16xf32>
    %90 = vector.multi_reduction <add>, %89, %cst_21 [1] : vector<16x32xf32> to vector<16xf32>
    %91 = vector.shape_cast %90 : vector<16xf32> to vector<16x1xf32>
    %cst_22 = arith.constant 3.200000e+01 : f32
    %92 = vector.broadcast %cst_22 : f32 to vector<16x1xf32>
    %93 = arith.divf %91, %92 : vector<16x1xf32>
    %94 = vector.broadcast %86 : vector<16x1xf32> to vector<16x32xf32>
    %95 = arith.subf %80, %94 : vector<16x32xf32>
    %cst_23 = arith.constant 9.99999974E-6 : f32
    %96 = vector.broadcast %cst_23 : f32 to vector<16x1xf32>
    %97 = arith.addf %93, %96 : vector<16x1xf32>
    %98 = math.rsqrt %97 : vector<16x1xf32>
    %99 = vector.broadcast %98 : vector<16x1xf32> to vector<16x32xf32>
    %100 = arith.mulf %95, %99 : vector<16x32xf32>
    %101 = vector.broadcast %81 : vector<1x32xf32> to vector<16x32xf32>
    %102 = arith.mulf %100, %101 : vector<16x32xf32>
    %103 = vector.broadcast %82 : vector<1x32xf32> to vector<16x32xf32>
    %104 = arith.addf %102, %103 : vector<16x32xf32>
    %c184 = arith.constant 184 : index
    %c0_24 = arith.constant 0 : index
    %105 = vector.load %arg1[%c184, %c0_24] : memref<536x128xf32, #tpu.memory_space<vmem>>, vector<32x64xf32>
    %cst_25 = arith.constant dense<0.000000e+00> : vector<16x64xf32>
    %106 = tpu.matmul %104, %105, %cst_25 {dimension_numbers = #tpu.dot_dimension_numbers<[1], [0], [0], [1], [0, 0, 1, 1], [], []>} : vector<16x32xf32>, vector<32x64xf32>, vector<16x64xf32> -> vector<16x64xf32>
    %c216 = arith.constant 216 : index
    %c0_26 = arith.constant 0 : index
    %107 = vector.load %arg1[%c216, %c0_26] : memref<536x128xf32, #tpu.memory_space<vmem>>, vector<1x64xf32>
    %108 = vector.broadcast %107 : vector<1x64xf32> to vector<16x64xf32>
    %109 = arith.addf %106, %108 : vector<16x64xf32>
    %cst_27 = arith.constant 5.000000e-01 : f32
    %110 = vector.broadcast %cst_27 : f32 to vector<16x64xf32>
    %111 = arith.mulf %110, %109 : vector<16x64xf32>
    %cst_28 = arith.constant 0.707106769 : f32
    %112 = vector.broadcast %cst_28 : f32 to vector<16x64xf32>
    %113 = arith.mulf %109, %112 : vector<16x64xf32>
    %cst_29 = arith.constant 0.000000e+00 : f32
    %114 = vector.broadcast %cst_29 : f32 to vector<16x64xf32>
    %115 = arith.cmpf oge, %113, %114 : vector<16x64xf32>
    %cst_30 = arith.constant 1.000000e+00 : f32
    %cst_31 = arith.constant -1.000000e+00 : f32
    %116 = vector.broadcast %cst_30 : f32 to vector<16x64xf32>
    %117 = vector.broadcast %cst_31 : f32 to vector<16x64xf32>
    %118 = arith.select %115, %116, %117 : vector<16x64xi1>, vector<16x64xf32>
    %119 = math.absf %113 : vector<16x64xf32>
    %cst_32 = arith.constant 0.327591091 : f32
    %120 = vector.broadcast %cst_32 : f32 to vector<16x64xf32>
    %121 = arith.mulf %120, %119 : vector<16x64xf32>
    %cst_33 = arith.constant 1.000000e+00 : f32
    %122 = vector.broadcast %cst_33 : f32 to vector<16x64xf32>
    %123 = arith.addf %122, %121 : vector<16x64xf32>
    %cst_34 = arith.constant 1.000000e+00 : f32
    %124 = vector.broadcast %cst_34 : f32 to vector<16x64xf32>
    %125 = arith.divf %124, %123 : vector<16x64xf32>
    %cst_35 = arith.constant 1.06140542 : f32
    %126 = vector.broadcast %cst_35 : f32 to vector<16x64xf32>
    %127 = arith.mulf %126, %125 : vector<16x64xf32>
    %cst_36 = arith.constant -1.45315206 : f32
    %128 = vector.broadcast %cst_36 : f32 to vector<16x64xf32>
    %129 = arith.addf %127, %128 : vector<16x64xf32>
    %130 = arith.mulf %129, %125 : vector<16x64xf32>
    %cst_37 = arith.constant 1.42141378 : f32
    %131 = vector.broadcast %cst_37 : f32 to vector<16x64xf32>
    %132 = arith.addf %130, %131 : vector<16x64xf32>
    %133 = arith.mulf %132, %125 : vector<16x64xf32>
    %cst_38 = arith.constant -0.284496725 : f32
    %134 = vector.broadcast %cst_38 : f32 to vector<16x64xf32>
    %135 = arith.addf %133, %134 : vector<16x64xf32>
    %136 = arith.mulf %135, %125 : vector<16x64xf32>
    %cst_39 = arith.constant 0.254829586 : f32
    %137 = vector.broadcast %cst_39 : f32 to vector<16x64xf32>
    %138 = arith.addf %136, %137 : vector<16x64xf32>
    %139 = arith.mulf %138, %125 : vector<16x64xf32>
    %cst_40 = arith.constant 0.000000e+00 : f32
    %140 = vector.broadcast %cst_40 : f32 to vector<16x64xf32>
    %141 = arith.subf %140, %119 : vector<16x64xf32>
    %142 = arith.mulf %141, %119 : vector<16x64xf32>
    %143 = math.exp %142 : vector<16x64xf32>
    %144 = arith.mulf %139, %143 : vector<16x64xf32>
    %cst_41 = arith.constant 1.000000e+00 : f32
    %145 = vector.broadcast %cst_41 : f32 to vector<16x64xf32>
    %146 = arith.subf %145, %144 : vector<16x64xf32>
    %147 = arith.mulf %118, %146 : vector<16x64xf32>
    %cst_42 = arith.constant 1.000000e+00 : f32
    %148 = vector.broadcast %cst_42 : f32 to vector<16x64xf32>
    %149 = arith.addf %148, %147 : vector<16x64xf32>
    %150 = arith.mulf %111, %149 : vector<16x64xf32>
    %c224 = arith.constant 224 : index
    %c0_43 = arith.constant 0 : index
    %151 = vector.load %arg1[%c224, %c0_43] : memref<536x128xf32, #tpu.memory_space<vmem>>, vector<64x32xf32>
    %cst_44 = arith.constant dense<0.000000e+00> : vector<16x32xf32>
    %152 = tpu.matmul %150, %151, %cst_44 {dimension_numbers = #tpu.dot_dimension_numbers<[1], [0], [0], [1], [0, 0, 1, 1], [], []>} : vector<16x64xf32>, vector<64x32xf32>, vector<16x32xf32> -> vector<16x32xf32>
    %c288 = arith.constant 288 : index
    %c0_45 = arith.constant 0 : index
    %153 = vector.load %arg1[%c288, %c0_45] : memref<536x128xf32, #tpu.memory_space<vmem>>, vector<1x32xf32>
    %154 = vector.broadcast %153 : vector<1x32xf32> to vector<16x32xf32>
    %155 = arith.addf %152, %154 : vector<16x32xf32>
    %156 = arith.addf %155, %104 : vector<16x32xf32>
    %c296 = arith.constant 296 : index
    %c0_46 = arith.constant 0 : index
    %157 = vector.load %arg1[%c296, %c0_46] : memref<536x128xf32, #tpu.memory_space<vmem>>, vector<1x32xf32>
    %c304 = arith.constant 304 : index
    %c0_47 = arith.constant 0 : index
    %158 = vector.load %arg1[%c304, %c0_47] : memref<536x128xf32, #tpu.memory_space<vmem>>, vector<1x32xf32>
    %cst_48 = arith.constant dense<0.000000e+00> : vector<16xf32>
    %159 = vector.multi_reduction <add>, %156, %cst_48 [1] : vector<16x32xf32> to vector<16xf32>
    %160 = vector.shape_cast %159 : vector<16xf32> to vector<16x1xf32>
    %cst_49 = arith.constant 3.200000e+01 : f32
    %161 = vector.broadcast %cst_49 : f32 to vector<16x1xf32>
    %162 = arith.divf %160, %161 : vector<16x1xf32>
    %163 = vector.broadcast %162 : vector<16x1xf32> to vector<16x32xf32>
    %164 = arith.subf %156, %163 : vector<16x32xf32>
    %165 = arith.mulf %164, %164 : vector<16x32xf32>
    %cst_50 = arith.constant dense<0.000000e+00> : vector<16xf32>
    %166 = vector.multi_reduction <add>, %165, %cst_50 [1] : vector<16x32xf32> to vector<16xf32>
    %167 = vector.shape_cast %166 : vector<16xf32> to vector<16x1xf32>
    %cst_51 = arith.constant 3.200000e+01 : f32
    %168 = vector.broadcast %cst_51 : f32 to vector<16x1xf32>
    %169 = arith.divf %167, %168 : vector<16x1xf32>
    %170 = vector.broadcast %162 : vector<16x1xf32> to vector<16x32xf32>
    %171 = arith.subf %156, %170 : vector<16x32xf32>
    %cst_52 = arith.constant 9.99999974E-6 : f32
    %172 = vector.broadcast %cst_52 : f32 to vector<16x1xf32>
    %173 = arith.addf %169, %172 : vector<16x1xf32>
    %174 = math.rsqrt %173 : vector<16x1xf32>
    %175 = vector.broadcast %174 : vector<16x1xf32> to vector<16x32xf32>
    %176 = arith.mulf %171, %175 : vector<16x32xf32>
    %177 = vector.broadcast %157 : vector<1x32xf32> to vector<16x32xf32>
    %178 = arith.mulf %176, %177 : vector<16x32xf32>
    %179 = vector.broadcast %158 : vector<1x32xf32> to vector<16x32xf32>
    %180 = arith.addf %178, %179 : vector<16x32xf32>
    %c312 = arith.constant 312 : index
    %c0_53 = arith.constant 0 : index
    %181 = vector.load %arg1[%c312, %c0_53] : memref<536x128xf32, #tpu.memory_space<vmem>>, vector<32x96xf32>
    %cst_54 = arith.constant dense<0.000000e+00> : vector<16x96xf32>
    %182 = tpu.matmul %180, %181, %cst_54 {dimension_numbers = #tpu.dot_dimension_numbers<[1], [0], [0], [1], [0, 0, 1, 1], [], []>} : vector<16x32xf32>, vector<32x96xf32>, vector<16x96xf32> -> vector<16x96xf32>
    %c344 = arith.constant 344 : index
    %c0_55 = arith.constant 0 : index
    %183 = vector.load %arg1[%c344, %c0_55] : memref<536x128xf32, #tpu.memory_space<vmem>>, vector<1x96xf32>
    %184 = vector.broadcast %183 : vector<1x96xf32> to vector<16x96xf32>
    %185 = arith.addf %182, %184 : vector<16x96xf32>
    %186 = vector.extract_strided_slice %185 {offsets = [0, 0], sizes = [16, 8], strides = [1, 1]} : vector<16x96xf32> to vector<16x8xf32>
    %187 = vector.shape_cast %186 : vector<16x8xf32> to vector<2x8x8xf32>
    %188 = vector.extract_strided_slice %185 {offsets = [0, 32], sizes = [16, 8], strides = [1, 1]} : vector<16x96xf32> to vector<16x8xf32>
    %189 = vector.shape_cast %188 : vector<16x8xf32> to vector<2x8x8xf32>
    %190 = vector.extract_strided_slice %185 {offsets = [0, 64], sizes = [16, 8], strides = [1, 1]} : vector<16x96xf32> to vector<16x8xf32>
    %191 = vector.shape_cast %190 : vector<16x8xf32> to vector<2x8x8xf32>
    %192 = vector.extract_strided_slice %185 {offsets = [0, 8], sizes = [16, 8], strides = [1, 1]} : vector<16x96xf32> to vector<16x8xf32>
    %193 = vector.shape_cast %192 : vector<16x8xf32> to vector<2x8x8xf32>
    %194 = vector.extract_strided_slice %185 {offsets = [0, 40], sizes = [16, 8], strides = [1, 1]} : vector<16x96xf32> to vector<16x8xf32>
    %195 = vector.shape_cast %194 : vector<16x8xf32> to vector<2x8x8xf32>
    %196 = vector.extract_strided_slice %185 {offsets = [0, 72], sizes = [16, 8], strides = [1, 1]} : vector<16x96xf32> to vector<16x8xf32>
    %197 = vector.shape_cast %196 : vector<16x8xf32> to vector<2x8x8xf32>
    %198 = vector.extract_strided_slice %185 {offsets = [0, 16], sizes = [16, 8], strides = [1, 1]} : vector<16x96xf32> to vector<16x8xf32>
    %199 = vector.shape_cast %198 : vector<16x8xf32> to vector<2x8x8xf32>
    %200 = vector.extract_strided_slice %185 {offsets = [0, 48], sizes = [16, 8], strides = [1, 1]} : vector<16x96xf32> to vector<16x8xf32>
    %201 = vector.shape_cast %200 : vector<16x8xf32> to vector<2x8x8xf32>
    %202 = vector.extract_strided_slice %185 {offsets = [0, 80], sizes = [16, 8], strides = [1, 1]} : vector<16x96xf32> to vector<16x8xf32>
    %203 = vector.shape_cast %202 : vector<16x8xf32> to vector<2x8x8xf32>
    %204 = vector.extract_strided_slice %185 {offsets = [0, 24], sizes = [16, 8], strides = [1, 1]} : vector<16x96xf32> to vector<16x8xf32>
    %205 = vector.shape_cast %204 : vector<16x8xf32> to vector<2x8x8xf32>
    %206 = vector.extract_strided_slice %185 {offsets = [0, 56], sizes = [16, 8], strides = [1, 1]} : vector<16x96xf32> to vector<16x8xf32>
    %207 = vector.shape_cast %206 : vector<16x8xf32> to vector<2x8x8xf32>
    %208 = vector.extract_strided_slice %185 {offsets = [0, 88], sizes = [16, 8], strides = [1, 1]} : vector<16x96xf32> to vector<16x8xf32>
    %209 = vector.shape_cast %208 : vector<16x8xf32> to vector<2x8x8xf32>
    %210 = tpu.concatenate %187, %193, %199, %205 in 0 : vector<2x8x8xf32>, vector<2x8x8xf32>, vector<2x8x8xf32>, vector<2x8x8xf32> -> vector<8x8x8xf32>
    %211 = tpu.concatenate %189, %195, %201, %207 in 0 : vector<2x8x8xf32>, vector<2x8x8xf32>, vector<2x8x8xf32>, vector<2x8x8xf32> -> vector<8x8x8xf32>
    %212 = tpu.concatenate %191, %197, %203, %209 in 0 : vector<2x8x8xf32>, vector<2x8x8xf32>, vector<2x8x8xf32>, vector<2x8x8xf32> -> vector<8x8x8xf32>
    "tpu.trace_start"() <{level = 10 : i32, message = "zqd,zkd->zqk"}> : () -> ()
    %cst_56 = arith.constant dense<0.000000e+00> : vector<8x8x8xf32>
    %213 = tpu.matmul %210, %211, %cst_56 {dimension_numbers = #tpu.dot_dimension_numbers<[2], [2], [1], [1], [0, 0, 0, 1, 1, 1], [0], [0]>} : vector<8x8x8xf32>, vector<8x8x8xf32>, vector<8x8x8xf32> -> vector<8x8x8xf32>
    "tpu.trace_stop"() : () -> ()
    %214 = arith.addf %213, %18 : vector<8x8x8xf32>
    %cst_57 = arith.constant 0.353553385 : f32
    %215 = vector.broadcast %cst_57 : f32 to vector<8x8x8xf32>
    %216 = arith.mulf %214, %215 : vector<8x8x8xf32>
    %cst_58 = arith.constant dense<0xFF800000> : vector<8x8xf32>
    %217 = vector.multi_reduction <maximumf>, %216, %cst_58 [2] : vector<8x8x8xf32> to vector<8x8xf32>
    %218 = vector.shape_cast %217 : vector<8x8xf32> to vector<8x8x1xf32>
    %219 = vector.broadcast %218 : vector<8x8x1xf32> to vector<8x8x8xf32>
    %220 = arith.subf %216, %219 : vector<8x8x8xf32>
    %221 = math.exp %220 : vector<8x8x8xf32>
    %cst_59 = arith.constant dense<0.000000e+00> : vector<8x8xf32>
    %222 = vector.multi_reduction <add>, %221, %cst_59 [2] : vector<8x8x8xf32> to vector<8x8xf32>
    %223 = vector.shape_cast %222 : vector<8x8xf32> to vector<8x8x1xf32>
    %224 = tpu.reciprocal %223 {approx = true} : vector<8x8x1xf32> -> vector<8x8x1xf32>
    %225 = vector.broadcast %224 : vector<8x8x1xf32> to vector<8x8x8xf32>
    %226 = arith.mulf %221, %225 : vector<8x8x8xf32>
    "tpu.trace_start"() <{level = 10 : i32, message = "zqk,zkd->zqd"}> : () -> ()
    %cst_60 = arith.constant dense<0.000000e+00> : vector<8x8x8xf32>
    %227 = tpu.matmul %226, %212, %cst_60 {dimension_numbers = #tpu.dot_dimension_numbers<[2], [1], [1], [2], [0, 0, 0, 1, 1, 2], [0], [0]>} : vector<8x8x8xf32>, vector<8x8x8xf32>, vector<8x8x8xf32> -> vector<8x8x8xf32>
    "tpu.trace_stop"() : () -> ()
    %228 = vector.extract_strided_slice %227 {offsets = [0, 0, 0], sizes = [2, 8, 8], strides = [1, 1, 1]} : vector<8x8x8xf32> to vector<2x8x8xf32>
    %229 = vector.shape_cast %228 : vector<2x8x8xf32> to vector<16x8xf32>
    %230 = vector.extract_strided_slice %227 {offsets = [2, 0, 0], sizes = [2, 8, 8], strides = [1, 1, 1]} : vector<8x8x8xf32> to vector<2x8x8xf32>
    %231 = vector.shape_cast %230 : vector<2x8x8xf32> to vector<16x8xf32>
    %232 = vector.extract_strided_slice %227 {offsets = [4, 0, 0], sizes = [2, 8, 8], strides = [1, 1, 1]} : vector<8x8x8xf32> to vector<2x8x8xf32>
    %233 = vector.shape_cast %232 : vector<2x8x8xf32> to vector<16x8xf32>
    %234 = vector.extract_strided_slice %227 {offsets = [6, 0, 0], sizes = [2, 8, 8], strides = [1, 1, 1]} : vector<8x8x8xf32> to vector<2x8x8xf32>
    %235 = vector.shape_cast %234 : vector<2x8x8xf32> to vector<16x8xf32>
    %236 = tpu.concatenate %229, %231, %233, %235 in 1 : vector<16x8xf32>, vector<16x8xf32>, vector<16x8xf32>, vector<16x8xf32> -> vector<16x32xf32>
    %c352 = arith.constant 352 : index
    %c0_61 = arith.constant 0 : index
    %237 = vector.load %arg1[%c352, %c0_61] : memref<536x128xf32, #tpu.memory_space<vmem>>, vector<32x32xf32>
    %cst_62 = arith.constant dense<0.000000e+00> : vector<16x32xf32>
    %238 = tpu.matmul %236, %237, %cst_62 {dimension_numbers = #tpu.dot_dimension_numbers<[1], [0], [0], [1], [0, 0, 1, 1], [], []>} : vector<16x32xf32>, vector<32x32xf32>, vector<16x32xf32> -> vector<16x32xf32>
    %c384 = arith.constant 384 : index
    %c0_63 = arith.constant 0 : index
    %239 = vector.load %arg1[%c384, %c0_63] : memref<536x128xf32, #tpu.memory_space<vmem>>, vector<1x32xf32>
    %240 = vector.broadcast %239 : vector<1x32xf32> to vector<16x32xf32>
    %241 = arith.addf %238, %240 : vector<16x32xf32>
    %242 = arith.addf %241, %180 : vector<16x32xf32>
    %c392 = arith.constant 392 : index
    %c0_64 = arith.constant 0 : index
    %243 = vector.load %arg1[%c392, %c0_64] : memref<536x128xf32, #tpu.memory_space<vmem>>, vector<1x32xf32>
    %c400 = arith.constant 400 : index
    %c0_65 = arith.constant 0 : index
    %244 = vector.load %arg1[%c400, %c0_65] : memref<536x128xf32, #tpu.memory_space<vmem>>, vector<1x32xf32>
    %cst_66 = arith.constant dense<0.000000e+00> : vector<16xf32>
    %245 = vector.multi_reduction <add>, %242, %cst_66 [1] : vector<16x32xf32> to vector<16xf32>
    %246 = vector.shape_cast %245 : vector<16xf32> to vector<16x1xf32>
    %cst_67 = arith.constant 3.200000e+01 : f32
    %247 = vector.broadcast %cst_67 : f32 to vector<16x1xf32>
    %248 = arith.divf %246, %247 : vector<16x1xf32>
    %249 = vector.broadcast %248 : vector<16x1xf32> to vector<16x32xf32>
    %250 = arith.subf %242, %249 : vector<16x32xf32>
    %251 = arith.mulf %250, %250 : vector<16x32xf32>
    %cst_68 = arith.constant dense<0.000000e+00> : vector<16xf32>
    %252 = vector.multi_reduction <add>, %251, %cst_68 [1] : vector<16x32xf32> to vector<16xf32>
    %253 = vector.shape_cast %252 : vector<16xf32> to vector<16x1xf32>
    %cst_69 = arith.constant 3.200000e+01 : f32
    %254 = vector.broadcast %cst_69 : f32 to vector<16x1xf32>
    %255 = arith.divf %253, %254 : vector<16x1xf32>
    %256 = vector.broadcast %248 : vector<16x1xf32> to vector<16x32xf32>
    %257 = arith.subf %242, %256 : vector<16x32xf32>
    %cst_70 = arith.constant 9.99999974E-6 : f32
    %258 = vector.broadcast %cst_70 : f32 to vector<16x1xf32>
    %259 = arith.addf %255, %258 : vector<16x1xf32>
    %260 = math.rsqrt %259 : vector<16x1xf32>
    %261 = vector.broadcast %260 : vector<16x1xf32> to vector<16x32xf32>
    %262 = arith.mulf %257, %261 : vector<16x32xf32>
    %263 = vector.broadcast %243 : vector<1x32xf32> to vector<16x32xf32>
    %264 = arith.mulf %262, %263 : vector<16x32xf32>
    %265 = vector.broadcast %244 : vector<1x32xf32> to vector<16x32xf32>
    %266 = arith.addf %264, %265 : vector<16x32xf32>
    %c408 = arith.constant 408 : index
    %c0_71 = arith.constant 0 : index
    %267 = vector.load %arg1[%c408, %c0_71] : memref<536x128xf32, #tpu.memory_space<vmem>>, vector<32x64xf32>
    %cst_72 = arith.constant dense<0.000000e+00> : vector<16x64xf32>
    %268 = tpu.matmul %266, %267, %cst_72 {dimension_numbers = #tpu.dot_dimension_numbers<[1], [0], [0], [1], [0, 0, 1, 1], [], []>} : vector<16x32xf32>, vector<32x64xf32>, vector<16x64xf32> -> vector<16x64xf32>
    %c440 = arith.constant 440 : index
    %c0_73 = arith.constant 0 : index
    %269 = vector.load %arg1[%c440, %c0_73] : memref<536x128xf32, #tpu.memory_space<vmem>>, vector<1x64xf32>
    %270 = vector.broadcast %269 : vector<1x64xf32> to vector<16x64xf32>
    %271 = arith.addf %268, %270 : vector<16x64xf32>
    %cst_74 = arith.constant 5.000000e-01 : f32
    %272 = vector.broadcast %cst_74 : f32 to vector<16x64xf32>
    %273 = arith.mulf %272, %271 : vector<16x64xf32>
    %cst_75 = arith.constant 0.707106769 : f32
    %274 = vector.broadcast %cst_75 : f32 to vector<16x64xf32>
    %275 = arith.mulf %271, %274 : vector<16x64xf32>
    %cst_76 = arith.constant 0.000000e+00 : f32
    %276 = vector.broadcast %cst_76 : f32 to vector<16x64xf32>
    %277 = arith.cmpf oge, %275, %276 : vector<16x64xf32>
    %cst_77 = arith.constant 1.000000e+00 : f32
    %cst_78 = arith.constant -1.000000e+00 : f32
    %278 = vector.broadcast %cst_77 : f32 to vector<16x64xf32>
    %279 = vector.broadcast %cst_78 : f32 to vector<16x64xf32>
    %280 = arith.select %277, %278, %279 : vector<16x64xi1>, vector<16x64xf32>
    %281 = math.absf %275 : vector<16x64xf32>
    %cst_79 = arith.constant 0.327591091 : f32
    %282 = vector.broadcast %cst_79 : f32 to vector<16x64xf32>
    %283 = arith.mulf %282, %281 : vector<16x64xf32>
    %cst_80 = arith.constant 1.000000e+00 : f32
    %284 = vector.broadcast %cst_80 : f32 to vector<16x64xf32>
    %285 = arith.addf %284, %283 : vector<16x64xf32>
    %cst_81 = arith.constant 1.000000e+00 : f32
    %286 = vector.broadcast %cst_81 : f32 to vector<16x64xf32>
    %287 = arith.divf %286, %285 : vector<16x64xf32>
    %cst_82 = arith.constant 1.06140542 : f32
    %288 = vector.broadcast %cst_82 : f32 to vector<16x64xf32>
    %289 = arith.mulf %288, %287 : vector<16x64xf32>
    %cst_83 = arith.constant -1.45315206 : f32
    %290 = vector.broadcast %cst_83 : f32 to vector<16x64xf32>
    %291 = arith.addf %289, %290 : vector<16x64xf32>
    %292 = arith.mulf %291, %287 : vector<16x64xf32>
    %cst_84 = arith.constant 1.42141378 : f32
    %293 = vector.broadcast %cst_84 : f32 to vector<16x64xf32>
    %294 = arith.addf %292, %293 : vector<16x64xf32>
    %295 = arith.mulf %294, %287 : vector<16x64xf32>
    %cst_85 = arith.constant -0.284496725 : f32
    %296 = vector.broadcast %cst_85 : f32 to vector<16x64xf32>
    %297 = arith.addf %295, %296 : vector<16x64xf32>
    %298 = arith.mulf %297, %287 : vector<16x64xf32>
    %cst_86 = arith.constant 0.254829586 : f32
    %299 = vector.broadcast %cst_86 : f32 to vector<16x64xf32>
    %300 = arith.addf %298, %299 : vector<16x64xf32>
    %301 = arith.mulf %300, %287 : vector<16x64xf32>
    %cst_87 = arith.constant 0.000000e+00 : f32
    %302 = vector.broadcast %cst_87 : f32 to vector<16x64xf32>
    %303 = arith.subf %302, %281 : vector<16x64xf32>
    %304 = arith.mulf %303, %281 : vector<16x64xf32>
    %305 = math.exp %304 : vector<16x64xf32>
    %306 = arith.mulf %301, %305 : vector<16x64xf32>
    %cst_88 = arith.constant 1.000000e+00 : f32
    %307 = vector.broadcast %cst_88 : f32 to vector<16x64xf32>
    %308 = arith.subf %307, %306 : vector<16x64xf32>
    %309 = arith.mulf %280, %308 : vector<16x64xf32>
    %cst_89 = arith.constant 1.000000e+00 : f32
    %310 = vector.broadcast %cst_89 : f32 to vector<16x64xf32>
    %311 = arith.addf %310, %309 : vector<16x64xf32>
    %312 = arith.mulf %273, %311 : vector<16x64xf32>
    %c448 = arith.constant 448 : index
    %c0_90 = arith.constant 0 : index
    %313 = vector.load %arg1[%c448, %c0_90] : memref<536x128xf32, #tpu.memory_space<vmem>>, vector<64x32xf32>
    %cst_91 = arith.constant dense<0.000000e+00> : vector<16x32xf32>
    %314 = tpu.matmul %312, %313, %cst_91 {dimension_numbers = #tpu.dot_dimension_numbers<[1], [0], [0], [1], [0, 0, 1, 1], [], []>} : vector<16x64xf32>, vector<64x32xf32>, vector<16x32xf32> -> vector<16x32xf32>
    %c512 = arith.constant 512 : index
    %c0_92 = arith.constant 0 : index
    %315 = vector.load %arg1[%c512, %c0_92] : memref<536x128xf32, #tpu.memory_space<vmem>>, vector<1x32xf32>
    %316 = vector.broadcast %315 : vector<1x32xf32> to vector<16x32xf32>
    %317 = arith.addf %314, %316 : vector<16x32xf32>
    %318 = arith.addf %317, %266 : vector<16x32xf32>
    %c520 = arith.constant 520 : index
    %c0_93 = arith.constant 0 : index
    %319 = vector.load %arg1[%c520, %c0_93] : memref<536x128xf32, #tpu.memory_space<vmem>>, vector<1x32xf32>
    %c528 = arith.constant 528 : index
    %c0_94 = arith.constant 0 : index
    %320 = vector.load %arg1[%c528, %c0_94] : memref<536x128xf32, #tpu.memory_space<vmem>>, vector<1x32xf32>
    %cst_95 = arith.constant dense<0.000000e+00> : vector<16xf32>
    %321 = vector.multi_reduction <add>, %318, %cst_95 [1] : vector<16x32xf32> to vector<16xf32>
    %322 = vector.shape_cast %321 : vector<16xf32> to vector<16x1xf32>
    %cst_96 = arith.constant 3.200000e+01 : f32
    %323 = vector.broadcast %cst_96 : f32 to vector<16x1xf32>
    %324 = arith.divf %322, %323 : vector<16x1xf32>
    %325 = vector.broadcast %324 : vector<16x1xf32> to vector<16x32xf32>
    %326 = arith.subf %318, %325 : vector<16x32xf32>
    %327 = arith.mulf %326, %326 : vector<16x32xf32>
    %cst_97 = arith.constant dense<0.000000e+00> : vector<16xf32>
    %328 = vector.multi_reduction <add>, %327, %cst_97 [1] : vector<16x32xf32> to vector<16xf32>
    %329 = vector.shape_cast %328 : vector<16xf32> to vector<16x1xf32>
    %cst_98 = arith.constant 3.200000e+01 : f32
    %330 = vector.broadcast %cst_98 : f32 to vector<16x1xf32>
    %331 = arith.divf %329, %330 : vector<16x1xf32>
    %332 = vector.broadcast %324 : vector<16x1xf32> to vector<16x32xf32>
    %333 = arith.subf %318, %332 : vector<16x32xf32>
    %cst_99 = arith.constant 9.99999974E-6 : f32
    %334 = vector.broadcast %cst_99 : f32 to vector<16x1xf32>
    %335 = arith.addf %331, %334 : vector<16x1xf32>
    %336 = math.rsqrt %335 : vector<16x1xf32>
    %337 = vector.broadcast %336 : vector<16x1xf32> to vector<16x32xf32>
    %338 = arith.mulf %333, %337 : vector<16x32xf32>
    %339 = vector.broadcast %319 : vector<1x32xf32> to vector<16x32xf32>
    %340 = arith.mulf %338, %339 : vector<16x32xf32>
    %341 = vector.broadcast %320 : vector<1x32xf32> to vector<16x32xf32>
    %342 = arith.addf %340, %341 : vector<16x32xf32>
    %c72 = arith.constant 72 : index
    %c0_100 = arith.constant 0 : index
    %343 = vector.load %arg1[%c72, %c0_100] : memref<536x128xf32, #tpu.memory_space<vmem>>, vector<1x32xf32>
    %c80 = arith.constant 80 : index
    %c0_101 = arith.constant 0 : index
    %344 = vector.load %arg1[%c80, %c0_101] : memref<536x128xf32, #tpu.memory_space<vmem>>, vector<1x32xf32>
    %cst_102 = arith.constant dense<0.000000e+00> : vector<16xf32>
    %345 = vector.multi_reduction <add>, %342, %cst_102 [1] : vector<16x32xf32> to vector<16xf32>
    %346 = vector.shape_cast %345 : vector<16xf32> to vector<16x1xf32>
    %cst_103 = arith.constant 3.200000e+01 : f32
    %347 = vector.broadcast %cst_103 : f32 to vector<16x1xf32>
    %348 = arith.divf %346, %347 : vector<16x1xf32>
    %349 = vector.broadcast %348 : vector<16x1xf32> to vector<16x32xf32>
    %350 = arith.subf %342, %349 : vector<16x32xf32>
    %351 = arith.mulf %350, %350 : vector<16x32xf32>
    %cst_104 = arith.constant dense<0.000000e+00> : vector<16xf32>
    %352 = vector.multi_reduction <add>, %351, %cst_104 [1] : vector<16x32xf32> to vector<16xf32>
    %353 = vector.shape_cast %352 : vector<16xf32> to vector<16x1xf32>
    %cst_105 = arith.constant 3.200000e+01 : f32
    %354 = vector.broadcast %cst_105 : f32 to vector<16x1xf32>
    %355 = arith.divf %353, %354 : vector<16x1xf32>
    %356 = vector.broadcast %348 : vector<16x1xf32> to vector<16x32xf32>
    %357 = arith.subf %342, %356 : vector<16x32xf32>
    %cst_106 = arith.constant 9.99999974E-6 : f32
    %358 = vector.broadcast %cst_106 : f32 to vector<16x1xf32>
    %359 = arith.addf %355, %358 : vector<16x1xf32>
    %360 = math.rsqrt %359 : vector<16x1xf32>
    %361 = vector.broadcast %360 : vector<16x1xf32> to vector<16x32xf32>
    %362 = arith.mulf %357, %361 : vector<16x32xf32>
    %363 = vector.broadcast %343 : vector<1x32xf32> to vector<16x32xf32>
    %364 = arith.mulf %362, %363 : vector<16x32xf32>
    %365 = vector.broadcast %344 : vector<1x32xf32> to vector<16x32xf32>
    %366 = arith.addf %364, %365 : vector<16x32xf32>
    %c0_107 = arith.constant 0 : index
    %c0_108 = arith.constant 0 : index
    %367 = vector.load %arg2[%c0_107, %c0_108] : memref<16x32xf32, #tpu.memory_space<vmem>>, vector<16x32xf32>
    tpu.vector_store %arg2[%c0_107, %c0_108], %366 {strides = array<i32>} : memref<16x32xf32, #tpu.memory_space<vmem>>, vector<16x32xf32>,
    return
  }
}

</mosaic_0001>

<bundles_post_ra>
// kernel: gpt_forward.1
= control target key start
LH: loop header
LB: loop body
LE: loop exit
PB: predicated region body
PF: predicated region fallthrough
CT: control target
= control target key end

     0   :  { %7 = vsyncpa [#allocation3], 0  ;;  %s5202_s0 = inlined_call_operand.vmem [shape: s32[16,1], index: 0, kind: input, shape index: {}]   ;;  %s5203_s1 = inlined_call_operand.hbm [shape: f32[536,128], index: 1, kind: input, shape index: {}]   ;;  %s5204_s2 = inlined_call_operand.hbm [shape: f32[16,32], index: 2, kind: output, shape index: {}]  }
   0x1   :  { %8 = vsyncpa [#allocation4], 0  ;;  %s4670_s9 = smov [#allocation2]   ;;  %s4622_s13 = scalar_lea.hbm %s5203_s1, 8576 }
   0x2   :  { %s16_s10 = sshll.u32 %s4670_s9, 4  ;;  %p4623_p0 = scmp.ne.s32.totalorder %s5203_s1, %s4622_s13  ;;  %s17_s10 = int_to_ptr.vmem [resolvable:$true] %s16_s10 }
   0x3   :  { %p4626_p1 = scmp.lt.u32.totalorder %s4622_s13, %s5203_s1 }
   0x5   :  { %p4628_p2 = pnand %p4626_p1, %p4623_p0 }
   0x7   :  { %4631 = shalt.err (!%p4628_p2)
}
   0x8   :  { %s4632_s18 = scalar_lea.vmem %s17_s10, 8576  ;;  %p4637_p4 = scmp.lt.s32.totalorder %s17_s10, %s17_s10 }
   0x9   :  { %p4633_p3 = scmp.ne.s32.totalorder %s17_s10, %s4632_s18  ;;  %p4638_p5 = scmp.lt.s32.totalorder %s4632_s18, %s4632_s18 }
   0xb   :  { %p4639_p6 = por %p4638_p5, %p4637_p4 }
   0xd   :  { %p4640_p7 = pnand %p4639_p6, %p4633_p3 }
   0xf   :  { %4643 = shalt.err (!%p4640_p7)
}
  0x10   :  { %s4671_s19 = smov 128   ;;  %s4672_s20 = smov 8  }
  0x11   :  { %22 = dma.hbm_to_vmem [thread:$0]  %s5203_s1, 8576, %s17_s10, [#allocation3], %s4671_s19, %s4671_s19, %s4672_s20  }
  0x12   :  { %4666 = dma.done.wait [#allocation3], 8576  }
  0x13   :  { %4667 = vsyncadd [#allocation3], 4294958720  ;;  %v4673_v0 = vmov 0   ;;  %v26_v1 = vld [vmem:[%s5202_s0] sm:$0xff]  ;;  %v43_v3 = vld [vmem:[#allocation2 + $0x8] sm:$0xff]  ;;  %v4674_v16 = vmov 0.0   ;;  %v28_v17 = vlaneseq }
  0x14   :  { %4521 = vset.pattern.permute.xlu0 %v4673_v0  ;;  %v42_v2 = vld [vmem:[#allocation2] sm:$0xff]  ;;  %v44_v4 = vld [vmem:[#allocation2 + $0x10] sm:$0xff]  ;;  %v45_v5 = vld [vmem:[#allocation2 + $0x18] sm:$0xff]  ;;  %vm50_vm0 = vcmask 457728   ;;  %vm145_vm3 = vcmask 261120   ;;  %vm4675_vm4 = vmmov 0  }
  0x15   :  { %31 = vperm.xlu0 %4521, %v26_v1   ;;  %v27_v6 = vld [vmem:[%s5202_s0 + $0x8] sm:$0xff]  ;;  %v4413_v7 = vpack.c.bf16 %v43_v3, %v42_v2  ;;  %v4417_v8 = vpack.c.bf16 %v45_v5, %v44_v4  ;;  %v46_v9 = vld [vmem:[#allocation2 + $0x20] sm:$0xff]  ;;  %v136_v12 = vld [vmem:[#allocation2 + $0x58] sm:$0xff]  ;;  %v4724_v18 = vand.u32 127, %v28_v17  ;;  %s4676_s0 = smov 112   ;;  %s4677_s1 = smov 120  }
  0x16   :  { %v47_v10 = vld [vmem:[#allocation2 + $0x28] sm:$0xff]  ;;  %v137_v13 = vld [vmem:[#allocation2 + $0x60] sm:$0xff]  ;;  %v48_v15 = vld [vmem:[#allocation2 + $0x30] sm:$0xff]  ;;  %s4678_s27 = smov 104   ;;  %s4679_s28 = smov 96   ;;  %vm243_vm5 = vcmask 64512  }
  0x17   :  { %4414 = vmatprep.subr.bf16.mxu0 %v4413_v7  ;;  %v4421_v11 = vpack.c.bf16 %v47_v10, %v46_v9  ;;  %v4425_v14 = vpack.c.bf16 %v137_v13, %v136_v12  ;;  %v138_v23 = vld [vmem:[#allocation2 + $0x68] sm:$0xff]  ;;  %v139_v24 = vld [vmem:[#allocation2 + $0x70] sm:$0xff]  ;;  %v49_v26 = vld [vmem:[#allocation2 + $0x38] sm:$0xff]  ;;  %v133_v50 = vshrl.u32 %v28_v17, 7  ;;  %v4680_v51 = vmov -1e+20  }
  0x18   :  { %4416 = vmatpush3.bf16.msra.mxu0 %v4413_v7  ;;  %v4429_v25 = vpack.c.bf16 %v139_v24, %v138_v23  ;;  %v3921_v31 = vld [vmem:[#allocation2 + $0x78] ss:$0 sm:$0xff]  ;;  %s4681_s29 = smov 64   ;;  %s4682_s30 = smov 16   ;;  %vm1580_vm7 = vcmask 130048   ;;  %vm1583_vm8 = vcmask 195584  }
  0x19   :  { %34 = vperm.xlu0 %4521, %v27_v6   ;;  %4418 = vmatprep.subr.bf16.mxu0 %v4417_v8  ;;  %vm134_vm6 = vcmp.ge.s32.totalorder %v133_v50, %v4724_v18  ;;  %s4683_s3 = smov 24   ;;  %vm1876_vm11 = vcmask 523264   ;;  %s4685_s4 = smov [#allocation5]  }
  0x1a   :  { %4426 = vmatprep.subr.bf16.mxu1 %v4425_v14  ;;  %v4837_v52 = vsel %vm134_vm6, 0.0, %v4680_v51  ;;  %s3905_s5 = sshll.u32 %s4685_s4, 4  ;;  %s3906_s5 = int_to_ptr.vmem [resolvable:$true] %s3905_s5 }
  0x1b   :  { %4428 = vmatpush3.bf16.msra.mxu1 %v4425_v14  ;;  %s4644_s6 = scalar_lea.vmem %s3906_s5, 256  ;;  %p4649_p9 = scmp.lt.s32.totalorder %s3906_s5, %s3906_s5 }
  0x1c   :  { %4420 = vmatpush3.bf16.msra.mxu0 %v4417_v8  ;;  %4430 = vmatprep.subr.bf16.mxu1 %v4429_v25  ;;  %p4645_p8 = scmp.ne.s32.totalorder %s3906_s5, %s4644_s6  ;;  %p4650_p10 = scmp.lt.s32.totalorder %s4644_s6, %s4644_s6 }
  0x1d   :  { %4422 = vmatprep.subr.bf16.mxu0 %v4421_v11 }
  0x1e   :  { %p4651_p11 = por %p4650_p10, %p4649_p9 }
  0x1f   :  { %4432 = vmatpush3.bf16.msra.mxu1 %v4429_v25 }
  0x20   :  { %4424 = vmatpush3.bf16.msra.mxu0 %v4421_v11  ;;  %4160 = vmatprep.subr.mxu1 %v4674_v16  ;;  %p4652_p12 = pnand %p4651_p11, %p4645_p8 }
  0x21   :  { %4144 = vmatprep.subr.mxu0 %v48_v15 }
  0x24   :  { %4145 = vmatpush3.msra.mxu0 %v48_v15 }
  0x25   :  { %4170 = vmatprep.subr.mxu0 %v4674_v16 }
  0x94   :  { %v32_v19 = vpop.permute.xlu0 %31 }
  0x95   :  { %vm36_vm1 = vcmp.eq.s32.totalorder %v32_v19, %v4724_v18 }
  0x96   :  { %v3917_v20 = vsel %vm36_vm1, 1.0, %v4674_v16 }
  0x97   :  { %4146 = vmatprep.mubr.msk.f32.mxu0 %vm50_vm0, %v3917_v20 }
  0x98   :  { %v35_v21 = vpop.permute.xlu0 %34 }
  0x99   :  { %vm37_vm2 = vcmp.eq.s32.totalorder %v35_v21, %v4724_v18 }
  0x9a   :  { %v3918_v22 = vsel %vm37_vm2, 1.0, %v4674_v16 }
  0x9b   :  { %4147 = vmatmul.mubr.msk.f32.vlgmr.msra.gmra.mrb[0].mxu0 %vm50_vm0, %v3918_v22 }
  0x9c   :  { %4172 = vmatprep.mubr.msk.f32.mxu0 %vm4675_vm4, %v4674_v16 }
 0x16e   :  { %v4148_v27 = vpop.f32.mrb[0].mxu0 }
 0x16f   :  { %v123_v28 = vpop.f32.mrb[1].mxu0  ;;  %v4733_v30 = vadd.f32 %v4148_v27, %v49_v26 }
 0x170   :  { %v4731_v29 = vadd.f32 %v123_v28, %v49_v26 }
 0x172   :  { %4157 = vmatprep.mubr.msk.f32.mxu1 %vm145_vm3, %v4731_v29 }
 0x173   :  { %4158 = vmatmul.mubr.msk.f32.vlgmr.msra.gmra.mrb[0].mxu1 %vm145_vm3, %v4733_v30 }
 0x174   :  { %4162 = vmatprep.mubr.msk.f32.mxu1 %vm4675_vm4, %v4674_v16 }
 0x246   :  { %v4159_v32 = vpop.f32.mrb[0].mxu1 }
 0x247   :  { %v218_v33 = vpop.f32.mrb[1].mxu1  ;;  %v4749_v35 = vadd.f32 %v4159_v32, %v3921_v31 }
 0x248   :  { %v4743_v34 = vadd.f32 %v3921_v31, %v218_v33 }
 0x24a   :  { %233 = vrot.lane.b32.xlu0 %v4743_v34, %s4676_s0  ;;  %229 = vrot.lane.b32.xlu1 %v4743_v34, %s4677_s1 }
 0x24e   :  { %237 = vrot.lane.b32.xlu0 %v4743_v34, %s4678_s27  ;;  %231 = vrot.lane.b32.xlu1 %v4749_v35, %s4677_s1 }
 0x252   :  { %241 = vrot.lane.b32.xlu0 %v4743_v34, %s4679_s28  ;;  %235 = vrot.lane.b32.xlu1 %v4749_v35, %s4676_s0 }
 0x256   :  { %239 = vrot.lane.b32.xlu1 %v4749_v35, %s4678_s27 }
 0x25a   :  { %318 = vrot.lane.b32.xlu1 %v4749_v35, %s4679_s28 }
 0x2bc   :  { %v4763_v36 = vpop.permute.xlu0 %233  ;;  %v4765_v37 = vpop.permute.xlu1 %229 }
 0x2bd   :  { %394 = vrot.lane.b32.xlu0 %v4765_v37, %s4679_s28 }
 0x2c0   :  { %v4769_v38 = vpop.permute.xlu0 %237  ;;  %v4771_v39 = vpop.permute.xlu1 %231 }
 0x2c1   :  { %546 = vrot.lane.b32.xlu0 %v4763_v36, %s4679_s28  ;;  %470 = vrot.lane.b32.xlu1 %v4771_v39, %s4679_s28 }
 0x2c4   :  { %v242_v40 = vpop.permute.xlu0 %241  ;;  %v4777_v41 = vpop.permute.xlu1 %235 }
 0x2c5   :  { %4161 = vmatpush3.xpose.msk.msra.mxu1 %vm243_vm5, %v242_v40  ;;  %698 = vrot.lane.b32.xlu0 %v4769_v38, %s4679_s28 }
 0x2c6   :  { %622 = vrot.lane.b32.xlu1 %v4777_v41, %s4679_s28  ;;  %4165 = vmatprep.subr.mxu1 %v4674_v16 }
 0x2c8   :  { %4163 = vmatmul.mubr.msk.f32.vlgmr.msra.gmra.mrb[2].mxu1 %vm243_vm5, %v4743_v34  ;;  %v4787_v42 = vpop.permute.xlu1 %239 }
 0x2c9   :  { %4167 = vmatprep.mubr.msk.f32.mxu1 %vm4675_vm4, %v4674_v16 }
 0x2ca   :  { %774 = vrot.lane.b32.xlu1 %v4787_v42, %s4679_s28 }
 0x2cc   :  { %v319_v43 = vpop.permute.xlu1 %318 }
 0x2cd   :  { %4166 = vmatpush3.xpose.msk.msra.mxu1 %vm243_vm5, %v319_v43 }
 0x2ce   :  { %4175 = vmatprep.subr.mxu1 %v4674_v16 }
 0x2d0   :  { %4168 = vmatmul.mubr.msk.f32.vlgmr.msra.gmra.mrb[4].mxu1 %vm243_vm5, %v4749_v35 }
 0x2d1   :  { %4177 = vmatprep.mubr.msk.f32.mxu1 %vm4675_vm4, %v4674_v16 }
 0x32f   :  { %v395_v44 = vpop.permute.xlu0 %394 }
 0x330   :  { %4171 = vmatpush3.xpose.msk.msra.mxu0 %vm243_vm5, %v395_v44 }
 0x331   :  { %4180 = vmatprep.subr.mxu0 %v4674_v16 }
 0x333   :  { %4173 = vmatmul.mubr.msk.f32.vlgmr.msra.gmra.mrb[2].mxu0 %vm243_vm5, %v4765_v37  ;;  %v547_v45 = vpop.permute.xlu0 %546  ;;  %v471_v46 = vpop.permute.xlu1 %470 }
 0x334   :  { %4176 = vmatpush3.xpose.msk.msra.mxu1 %vm243_vm5, %v471_v46  ;;  %4181 = vmatpush3.xpose.msk.msra.mxu0 %vm243_vm5, %v547_v45 }
 0x335   :  { %4182 = vmatprep.mubr.msk.f32.mxu0 %vm4675_vm4, %v4674_v16  ;;  %4190 = vmatprep.subr.mxu0 %v4674_v16 }
 0x336   :  { %4185 = vmatprep.subr.mxu1 %v4674_v16 }
 0x337   :  { %4183 = vmatmul.mubr.msk.f32.vlgmr.msra.gmra.mrb[4].mxu0 %vm243_vm5, %v4763_v36  ;;  %v699_v47 = vpop.permute.xlu0 %698  ;;  %4178 = vmatmul.mubr.msk.f32.vlgmr.msra.gmra.mrb[6].mxu1 %vm243_vm5, %v4771_v39 }
 0x338   :  { %v623_v48 = vpop.permute.xlu1 %622  ;;  %4191 = vmatpush3.xpose.msk.msra.mxu0 %vm243_vm5, %v699_v47  ;;  %4187 = vmatprep.mubr.msk.f32.mxu1 %vm4675_vm4, %v4674_v16 }
 0x339   :  { %4186 = vmatpush3.xpose.msk.msra.mxu1 %vm243_vm5, %v623_v48  ;;  %4192 = vmatprep.mubr.msk.f32.mxu0 %vm4675_vm4, %v4674_v16 }
 0x33a   :  { %4195 = vmatprep.subr.mxu1 %v4674_v16  ;;  %4200 = vmatprep.subr.mxu0 %v4674_v16 }
 0x33b   :  { %4193 = vmatmul.mubr.msk.f32.vlgmr.msra.gmra.mrb[6].mxu0 %vm243_vm5, %v4769_v38 }
 0x33c   :  { %4188 = vmatmul.mubr.msk.f32.vlgmr.msra.gmra.mrb[8].mxu1 %vm243_vm5, %v4777_v41  ;;  %v775_v49 = vpop.permute.xlu1 %774  ;;  %4202 = vmatprep.mubr.msk.f32.mxu0 %vm4675_vm4, %v4674_v16 }
 0x33d   :  { %4196 = vmatpush3.xpose.msk.msra.mxu1 %vm243_vm5, %v775_v49  ;;  %4197 = vmatprep.mubr.msk.f32.mxu1 %vm4675_vm4, %v4674_v16 }
 0x33e   :  { %4205 = vmatprep.subr.mxu1 %v4674_v16 }
 0x340   :  { %4198 = vmatmul.mubr.msk.f32.vlgmr.msra.gmra.mrb[10].mxu1 %vm243_vm5, %v4787_v42 }
 0x341   :  { %4207 = vmatprep.mubr.msk.f32.mxu1 %vm4675_vm4, %v4674_v16 }
 0x39b   :  { %v314_v53 = vpop.f32.mrb[2].mxu1 }
 0x39c   :  { %v315_v54 = vadd.f32 %v314_v53, %v4837_v52  ;;  %v4164_v55 = vpop.f32.mrb[3].mxu1 }
 0x39e   :  { %v850_v56 = vmul.f32 0.35355338, %v315_v54 }
 0x3a0   :  { %v858_v57 = vsel %vm243_vm5, %v850_v56, -inf }
 0x3a1   :  { %859 = vmax.xlane.f32.xlu0 %v858_v57 }
 0x3a3   :  { %v390_v58 = vpop.f32.mrb[4].mxu1 }
 0x3a4   :  { %v391_v59 = vadd.f32 %v390_v58, %v4837_v52  ;;  %v4169_v60 = vpop.f32.mrb[5].mxu1 }
 0x3a6   :  { %v851_v61 = vmul.f32 0.35355338, %v391_v59 }
 0x3a8   :  { %v861_v62 = vsel %vm243_vm5, %v851_v61, -inf }
 0x3a9   :  { %862 = vmax.xlane.f32.xlu1 %v861_v62 }
 0x406   :  { %v466_v63 = vpop.f32.mrb[2].mxu0 }
 0x407   :  { %v467_v0 = vadd.f32 %v466_v63, %v4837_v52  ;;  %v4174_v1 = vpop.f32.mrb[3].mxu0 }
 0x409   :  { %v852_v2 = vmul.f32 0.35355338, %v467_v0 }
 0x40a   :  { %v542_v3 = vpop.f32.mrb[6].mxu1  ;;  %v618_v4 = vpop.f32.mrb[4].mxu0 }
 0x40b   :  { %v543_v5 = vadd.f32 %v542_v3, %v4837_v52  ;;  %v619_v6 = vadd.f32 %v618_v4, %v4837_v52  ;;  %v4179_v7 = vpop.f32.mrb[7].mxu1  ;;  %v4184_v8 = vpop.f32.mrb[5].mxu0  ;;  %v864_v9 = vsel %vm243_vm5, %v852_v2, -inf }
 0x40c   :  { %865 = vmax.xlane.f32.xlu0 %v864_v9 }
 0x40d   :  { %v853_v10 = vmul.f32 0.35355338, %v543_v5  ;;  %v854_v11 = vmul.f32 0.35355338, %v619_v6 }
 0x40e   :  { %v770_v12 = vpop.f32.mrb[6].mxu0 }
 0x40f   :  { %v694_v13 = vpop.f32.mrb[8].mxu1  ;;  %v771_v14 = vadd.f32 %v770_v12, %v4837_v52  ;;  %v4194_v15 = vpop.f32.mrb[7].mxu0  ;;  %v870_v17 = vsel %vm243_vm5, %v854_v11, -inf  ;;  %v867_v18 = vsel %vm243_vm5, %v853_v10, -inf }
 0x410   :  { %v695_v19 = vadd.f32 %v694_v13, %v4837_v52  ;;  %v4189_v20 = vpop.f32.mrb[9].mxu1  ;;  %871 = vmax.xlane.f32.xlu1 %v870_v17  ;;  %868 = vmax.xlane.f32.xlu0 %v867_v18 }
 0x411   :  { %v856_v21 = vmul.f32 0.35355338, %v771_v14 }
 0x412   :  { %v855_v22 = vmul.f32 0.35355338, %v695_v19 }
 0x413   :  { %v846_v23 = vpop.f32.mrb[10].mxu1  ;;  %v876_v24 = vsel %vm243_vm5, %v856_v21, -inf }
 0x414   :  { %v847_v25 = vadd.f32 %v846_v23, %v4837_v52  ;;  %v4199_v26 = vpop.f32.mrb[11].mxu1  ;;  %877 = vmax.xlane.f32.xlu1 %v876_v24  ;;  %v873_v27 = vsel %vm243_vm5, %v855_v22, -inf }
 0x415   :  { %874 = vmax.xlane.f32.xlu0 %v873_v27 }
 0x416   :  { %v857_v28 = vmul.f32 0.35355338, %v847_v25 }
 0x418   :  { %v879_v31 = vsel %vm243_vm5, %v857_v28, -inf }
 0x419   :  { %880 = vmax.xlane.f32.xlu0 %v879_v31 }
 0x425   :  { %946 = vrot.lane.b32.xlu1 %v4743_v34, %s4681_s29 }
 0x429   :  { %1098 = vrot.lane.b32.xlu1 %v4765_v37, %s4681_s29 }
 0x42d   :  { %1174 = vrot.lane.b32.xlu1 %v4771_v39, %s4681_s29 }
 0x42e   :  { %v860_v33 = vpop.xlane.xlu0 %859 }
 0x42f   :  { %1022 = vrot.lane.b32.xlu0 %v4749_v35, %s4681_s29  ;;  %v882_v43 = vsub.f32 %v850_v56, %v860_v33 }
 0x431   :  { %1326 = vrot.lane.b32.xlu1 %v4777_v41, %s4681_s29  ;;  %v890_v44 = vmul.f32 1.442695, %v882_v43 }
 0x433   :  { %1250 = vrot.lane.b32.xlu0 %v4763_v36, %s4681_s29 }
 0x436   :  { %v863_v32 = vpop.xlane.xlu1 %862 }
 0x437   :  { %v883_v40 = vsub.f32 %v851_v61, %v863_v32 }
 0x439   :  { %v892_v34 = vmul.f32 1.442695, %v883_v40 }
 0x43b   :  { %4522 = vpow2.f32 %v892_v34 }
 0x43c   :  { %4524 = vpow2.f32 %v890_v44 }
 0x445   :  { %v4867_v37 = vpop.eup %4522 }
 0x446   :  { %v4869_v39 = vpop.eup %4524  ;;  %v909_v35 = vsel %vm243_vm5, %v4867_v37, 0.0 }
 0x447   :  { %v906_v41 = vsel %vm243_vm5, %v4869_v39, 0.0 }
 0x452   :  { %910 = vadd.xlane.f32.xlu0 %v909_v35 }
 0x455   :  { %907 = vadd.xlane.f32.xlu1 %v906_v41 }
 0x499   :  { %v866_v36 = vpop.xlane.xlu0 %865 }
 0x49a   :  { %v884_v45 = vsub.f32 %v852_v2, %v866_v36 }
 0x49c   :  { %v894_v46 = vmul.f32 1.442695, %v884_v45 }
 0x49d   :  { %v869_v47 = vpop.xlane.xlu0 %868  ;;  %v872_v48 = vpop.xlane.xlu1 %871 }
 0x49e   :  { %4526 = vpow2.f32 %v894_v46  ;;  %v885_v49 = vsub.f32 %v853_v10, %v869_v47  ;;  %v886_v50 = vsub.f32 %v854_v11, %v872_v48 }
 0x4a0   :  { %v896_v51 = vmul.f32 1.442695, %v885_v49  ;;  %v898_v53 = vmul.f32 1.442695, %v886_v50  ;;  %v1586_v50 = vld [vmem:[#allocation2 + $0x80] sm:$0xff] }
 0x4a1   :  { %v878_v54 = vpop.xlane.xlu1 %877 }
 0x4a2   :  { %4528 = vpow2.f32 %v896_v51  ;;  %v875_v55 = vpop.xlane.xlu0 %874  ;;  %v888_v56 = vsub.f32 %v856_v21, %v878_v54  ;;  %v1587_v51 = vld [vmem:[#allocation2 + $0x88] sm:$0xff]  ;;  %v1588_v54 = vld [vmem:[#allocation2 + $0x90] sm:$0xff] }
 0x4a3   :  { %4530 = vpow2.f32 %v898_v53  ;;  %v887_v57 = vsub.f32 %v855_v22, %v875_v55  ;;  %v4433_v53 = vpack.c.bf16 %v1587_v51, %v1586_v50  ;;  %v1589_v55 = vld [vmem:[#allocation2 + $0x98] sm:$0xff]  ;;  %v3951_v50 = vld [vmem:[#allocation2 + $0xa8] ss:$0 sm:$0xff] }
 0x4a4   :  { %v902_v58 = vmul.f32 1.442695, %v888_v56  ;;  %v4437_v56 = vpack.c.bf16 %v1589_v55, %v1588_v54 }
 0x4a5   :  { %v900_v59 = vmul.f32 1.442695, %v887_v57  ;;  %v947_v60 = vpop.permute.xlu1 %946 }
 0x4a6   :  { %4532 = vpow2.f32 %v902_v58  ;;  %v881_v61 = vpop.xlane.xlu0 %880  ;;  %4201 = vmatpush3.msra.mxu0 %v947_v60 }
 0x4a7   :  { %4534 = vpow2.f32 %v900_v59  ;;  %v889_v62 = vsub.f32 %v857_v28, %v881_v61  ;;  %4210 = vmatprep.subr.mxu0 %v4674_v16 }
 0x4a8   :  { %v4527_v63 = vpop.eup %4526 }
 0x4a9   :  { %v904_v0 = vmul.f32 1.442695, %v889_v62  ;;  %v912_v1 = vsel %vm243_vm5, %v4527_v63, 0.0  ;;  %v1099_v13 = vpop.permute.xlu1 %1098 }
 0x4aa   :  { %v1023_v2 = vpop.permute.xlu0 %1022  ;;  %913 = vadd.xlane.f32.xlu1 %v912_v1 }
 0x4ab   :  { %4536 = vpow2.f32 %v904_v0  ;;  %4206 = vmatpush3.msra.mxu1 %v1023_v2 }
 0x4ac   :  { %v4529_v3 = vpop.eup %4528  ;;  %4215 = vmatprep.subr.mxu1 %v4674_v16 }
 0x4ad   :  { %v4531_v4 = vpop.eup %4530  ;;  %v915_v5 = vsel %vm243_vm5, %v4529_v3, 0.0  ;;  %v1175_v14 = vpop.permute.xlu1 %1174 }
 0x4ae   :  { %916 = vadd.xlane.f32.xlu0 %v915_v5  ;;  %v918_v6 = vsel %vm243_vm5, %v4531_v4, 0.0  ;;  %v1251_v15 = vpop.permute.xlu0 %1250 }
 0x4af   :  { %919 = vadd.xlane.f32.xlu1 %v918_v6 }
 0x4b0   :  { %v4880_v7 = vpop.eup %4532 }
 0x4b1   :  { %v4535_v8 = vpop.eup %4534  ;;  %v924_v9 = vsel %vm243_vm5, %v4880_v7, 0.0  ;;  %v1327_v17 = vpop.permute.xlu1 %1326 }
 0x4b2   :  { %v921_v10 = vsel %vm243_vm5, %v4535_v8, 0.0 }
 0x4b3   :  { %922 = vadd.xlane.f32.xlu0 %v921_v10  ;;  %925 = vadd.xlane.f32.xlu1 %v924_v9 }
 0x4b5   :  { %v4885_v11 = vpop.eup %4536 }
 0x4b6   :  { %v927_v12 = vsel %vm243_vm5, %v4885_v11, 0.0 }
 0x4b7   :  { %928 = vadd.xlane.f32.xlu0 %v927_v12 }
 0x4c4   :  { %1478 = vrot.lane.b32.xlu1 %v4787_v42, %s4681_s29 }
 0x4cd   :  { %1402 = vrot.lane.b32.xlu0 %v4769_v38, %s4681_s29 }
 0x4df   :  { %v911_v18 = vpop.xlane.xlu0 %910 }
 0x4e0   :  { %4538 = vrcp.f32 %v911_v18  ;;  %v3948_v18 = vld [vmem:[#allocation2 + $0xa0] ss:$0 sm:$0xff] }
 0x4e2   :  { %v908_v19 = vpop.xlane.xlu1 %907 }
 0x4e3   :  { %4540 = vrcp.f32 %v908_v19 }
 0x4ea   :  { %v4539_v20 = vpop.eup %4538 }
 0x4eb   :  { %v939_v21 = vmul.f32 %v4539_v20, %v4867_v37 }
 0x4ed   :  { %v4541_v22 = vpop.eup %4540  ;;  %4208 = vmatmul.mubr.msk.f32.vlgmr.msra.gmra.mrb[12].mxu1 %vm243_vm5, %v939_v21 }
 0x4ee   :  { %v938_v23 = vmul.f32 %v4541_v22, %v4869_v39  ;;  %4216 = vmatpush3.msra.mxu1 %v1175_v14  ;;  %4217 = vmatprep.mubr.msk.f32.mxu1 %vm4675_vm4, %v4674_v16 }
 0x4ef   :  { %4225 = vmatprep.subr.mxu1 %v4674_v16 }
 0x4f0   :  { %4203 = vmatmul.mubr.msk.f32.vlgmr.msra.gmra.mrb[8].mxu0 %vm243_vm5, %v938_v23 }
 0x4f1   :  { %4211 = vmatpush3.msra.mxu0 %v1099_v13  ;;  %4212 = vmatprep.mubr.msk.f32.mxu0 %vm4675_vm4, %v4674_v16 }
 0x4f2   :  { %4220 = vmatprep.subr.mxu0 %v4674_v16 }
 0x537   :  { %v914_v38 = vpop.xlane.xlu1 %913 }
 0x538   :  { %4542 = vrcp.f32 %v914_v38 }
 0x53b   :  { %v917_v42 = vpop.xlane.xlu0 %916 }
 0x53c   :  { %4544 = vrcp.f32 %v917_v42  ;;  %v920_v24 = vpop.xlane.xlu1 %919 }
 0x53d   :  { %4546 = vrcp.f32 %v920_v24 }
 0x540   :  { %v923_v25 = vpop.xlane.xlu0 %922  ;;  %v926_v26 = vpop.xlane.xlu1 %925 }
 0x541   :  { %4548 = vrcp.f32 %v923_v25 }
 0x542   :  { %v4543_v27 = vpop.eup %4542  ;;  %4550 = vrcp.f32 %v926_v26 }
 0x543   :  { %v940_v28 = vmul.f32 %v4543_v27, %v4527_v63 }
 0x544   :  { %v929_v31 = vpop.xlane.xlu0 %928  ;;  %v1479_v41 = vpop.permute.xlu1 %1478 }
 0x545   :  { %4552 = vrcp.f32 %v929_v31  ;;  %4213 = vmatmul.mubr.msk.f32.vlgmr.msra.gmra.mrb[10].mxu0 %vm243_vm5, %v940_v28 }
 0x546   :  { %v4545_v32 = vpop.eup %4544  ;;  %4221 = vmatpush3.msra.mxu0 %v1251_v15  ;;  %4222 = vmatprep.mubr.msk.f32.mxu0 %vm4675_vm4, %v4674_v16 }
 0x547   :  { %v4547_v33 = vpop.eup %4546  ;;  %v941_v40 = vmul.f32 %v4545_v32, %v4529_v3  ;;  %4230 = vmatprep.subr.mxu0 %v4674_v16 }
 0x548   :  { %v942_v43 = vmul.f32 %v4547_v33, %v4531_v4  ;;  %v1403_v34 = vpop.permute.xlu0 %1402 }
 0x549   :  { %4218 = vmatmul.mubr.msk.f32.vlgmr.msra.gmra.mrb[14].mxu1 %vm243_vm5, %v941_v40 }
 0x54a   :  { %4223 = vmatmul.mubr.msk.f32.vlgmr.msra.gmra.mrb[12].mxu0 %vm243_vm5, %v942_v43  ;;  %4226 = vmatpush3.msra.mxu1 %v1327_v17 }
 0x54b   :  { %v4549_v44 = vpop.eup %4548  ;;  %4231 = vmatpush3.msra.mxu0 %v1403_v34  ;;  %4227 = vmatprep.mubr.msk.f32.mxu1 %vm4675_vm4, %v4674_v16  ;;  %v1720_v34 = vld [vmem:[#allocation2 + $0xc0] sm:$0xff] }
 0x54c   :  { %v4551_v37 = vpop.eup %4550  ;;  %v943_v39 = vmul.f32 %v4549_v44, %v4535_v8  ;;  %4232 = vmatprep.mubr.msk.f32.mxu0 %vm4675_vm4, %v4674_v16  ;;  %4235 = vmatprep.subr.mxu1 %v4674_v16 }
 0x54d   :  { %v944_v35 = vmul.f32 %v4551_v37, %v4880_v7  ;;  %v1721_v37 = vld [vmem:[#allocation2 + $0xc8] sm:$0xff] }
 0x54e   :  { %4228 = vmatmul.mubr.msk.f32.vlgmr.msra.gmra.mrb[16].mxu1 %vm243_vm5, %v943_v39  ;;  %v1722_v39 = vld [vmem:[#allocation2 + $0xd0] sm:$0xff] }
 0x54f   :  { %v4553_v36 = vpop.eup %4552  ;;  %4233 = vmatmul.mubr.msk.f32.vlgmr.msra.gmra.mrb[14].mxu0 %vm243_vm5, %v944_v35  ;;  %4236 = vmatpush3.msra.mxu1 %v1479_v41  ;;  %v4445_v35 = vpack.c.bf16 %v1722_v39, %v1721_v37 }
 0x550   :  { %v945_v45 = vmul.f32 %v4553_v36, %v4885_v11  ;;  %4237 = vmatprep.mubr.msk.f32.mxu1 %vm4675_vm4, %v4674_v16  ;;  %4434 = vmatprep.subr.bf16.mxu1 %v4433_v53 }
 0x552   :  { %4238 = vmatmul.mubr.msk.f32.vlgmr.msra.gmra.mrb[18].mxu1 %vm243_vm5, %v945_v45 }
 0x553   :  { %4436 = vmatpush3.bf16.msra.mxu1 %v4433_v53  ;;  %v3952_v53 = vld [vmem:[#allocation2 + $0xb0] ss:$0 sm:$0xff] }
 0x554   :  { %4438 = vmatprep.subr.bf16.mxu1 %v4437_v56 }
 0x557   :  { %4440 = vmatpush3.bf16.msra.mxu1 %v4437_v56 }
 0x5c0   :  { %v1094_v46 = vpop.f32.mrb[12].mxu1 }
 0x5c1   :  { %v4209_v47 = vpop.f32.mrb[13].mxu1 }
 0x5c3   :  { %v1018_v48 = vpop.f32.mrb[8].mxu0 }
 0x5c4   :  { %v4204_v49 = vpop.f32.mrb[9].mxu0 }
 0x618   :  { %v1170_v57 = vpop.f32.mrb[10].mxu0 }
 0x619   :  { %1556 = vrot.lane.b32.xlu0 %v1170_v57, %s4672_s20  ;;  %v4214_v58 = vpop.f32.mrb[11].mxu0 }
 0x61c   :  { %v1246_v59 = vpop.f32.mrb[14].mxu1 }
 0x61d   :  { %v1322_v60 = vpop.f32.mrb[12].mxu0  ;;  %1558 = vrot.lane.b32.xlu1 %v1246_v59, %s4672_s20  ;;  %v4219_v61 = vpop.f32.mrb[15].mxu1 }
 0x61e   :  { %1564 = vrot.lane.b32.xlu0 %v1322_v60, %s4682_s30  ;;  %v4224_v62 = vpop.f32.mrb[13].mxu0  ;;  %v1863_v60 = vld [vmem:[#allocation2 + $0xe0] sm:$0xff]  ;;  %v1864_v61 = vld [vmem:[#allocation2 + $0xe8] sm:$0xff] }
 0x61f   :  { %v4449_v62 = vpack.c.bf16 %v1864_v61, %v1863_v60 }
 0x621   :  { %v1398_v63 = vpop.f32.mrb[16].mxu1  ;;  %4450 = vmatprep.subr.bf16.mxu0 %v4449_v62 }
 0x622   :  { %v1474_v0 = vpop.f32.mrb[14].mxu0  ;;  %1566 = vrot.lane.b32.xlu1 %v1398_v63, %s4682_s30  ;;  %v4229_v1 = vpop.f32.mrb[17].mxu1  ;;  %4452 = vmatpush3.bf16.msra.mxu0 %v4449_v62  ;;  %v1865_v63 = vld [vmem:[#allocation2 + $0xf0] sm:$0xff] }
 0x623   :  { %1572 = vrot.lane.b32.xlu0 %v1474_v0, %s4683_s3  ;;  %v4234_v2 = vpop.f32.mrb[15].mxu0  ;;  %v1866_v0 = vld [vmem:[#allocation2 + $0xf8] sm:$0xff] }
 0x624   :  { %v4453_v1 = vpack.c.bf16 %v1866_v0, %v1865_v63  ;;  %v1867_v2 = vld [vmem:[#allocation2 + $0x100] sm:$0xff] }
 0x625   :  { %v1550_v3 = vpop.f32.mrb[18].mxu1 }
 0x626   :  { %1574 = vrot.lane.b32.xlu1 %v1550_v3, %s4683_s3  ;;  %v4239_v4 = vpop.f32.mrb[19].mxu1  ;;  %4454 = vmatprep.subr.bf16.mxu0 %v4453_v1  ;;  %v1868_v3 = vld [vmem:[#allocation2 + $0x108] sm:$0xff] }
 0x627   :  { %4456 = vmatpush3.bf16.msra.mxu0 %v4453_v1  ;;  %v4457_v4 = vpack.c.bf16 %v1868_v3, %v1867_v2 }
 0x629   :  { %4458 = vmatprep.subr.bf16.mxu0 %v4457_v4 }
 0x62b   :  { %4460 = vmatpush3.bf16.msra.mxu0 %v4457_v4  ;;  %v3956_v4 = vld [vmem:[#allocation2 + $0x120] ss:$0 sm:$0xff] }
 0x68b   :  { %v1557_v5 = vpop.permute.xlu0 %1556 }
 0x68c   :  { %v1578_v8 = vsel %vm243_vm5, %v1018_v48, %v1557_v5  ;;  %v1869_v5 = vld [vmem:[#allocation2 + $0x110] sm:$0xff] }
 0x68f   :  { %v1559_v6 = vpop.permute.xlu1 %1558 }
 0x690   :  { %v1565_v7 = vpop.permute.xlu0 %1564  ;;  %v1579_v13 = vsel %vm243_vm5, %v1094_v46, %v1559_v6  ;;  %v1870_v6 = vld [vmem:[#allocation2 + $0x118] sm:$0xff] }
 0x691   :  { %v1581_v10 = vsel %vm1580_vm7, %v1578_v8, %v1565_v7  ;;  %v4461_v7 = vpack.c.bf16 %v1870_v6, %v1869_v5  ;;  %v3953_v8 = vld [vmem:[#allocation2 + $0xd8] ss:$0 sm:$0xff] }
 0x693   :  { %4462 = vmatprep.subr.bf16.mxu0 %v4461_v7 }
 0x694   :  { %v1567_v9 = vpop.permute.xlu1 %1566  ;;  %4464 = vmatpush3.bf16.msra.mxu0 %v4461_v7 }
 0x695   :  { %v1573_v11 = vpop.permute.xlu0 %1572  ;;  %v1582_v14 = vsel %vm1580_vm7, %v1579_v13, %v1567_v9  ;;  %4302 = vmatprep.subr.mxu0 %v4674_v16 }
 0x696   :  { %v1584_v12 = vsel %vm1583_vm8, %v1581_v10, %v1573_v11 }
 0x697   :  { %4248 = vmatprep.mubr.msk.f32.mxu1 %vm145_vm3, %v1584_v12 }
 0x698   :  { %v1575_v15 = vpop.permute.xlu1 %1574 }
 0x699   :  { %v1585_v17 = vsel %vm1583_vm8, %v1582_v14, %v1575_v15 }
 0x69a   :  { %4249 = vmatmul.mubr.msk.f32.vlgmr.msra.gmra.mrb[20].mxu1 %vm145_vm3, %v1585_v17 }
 0x76d   :  { %v4250_v19 = vpop.f32.mrb[20].mxu1 }
 0x76e   :  { %v1673_v20 = vadd.f32 %v4250_v19, %v3948_v18  ;;  %v1667_v21 = vpop.f32.mrb[21].mxu1 }
 0x76f   :  { %v1668_v22 = vadd.f32 %v3948_v18, %v1667_v21 }
 0x770   :  { %v1677_v23 = vadd.f32 %v1673_v20, %v4733_v30 }
 0x771   :  { %v1676_v38 = vadd.f32 %v1668_v22, %v4731_v29  ;;  %v1719_v29 = vld [vmem:[#allocation2 + $0xb8] sm:$0xff] }
 0x772   :  { %v1683_v42 = vsel %vm145_vm3, %v1677_v23, 0.0  ;;  %v4441_v44 = vpack.c.bf16 %v1720_v34, %v1719_v29 }
 0x773   :  { %1684 = vadd.xlane.f32.xlu1 %v1683_v42  ;;  %v1680_v24 = vsel %vm145_vm3, %v1676_v38, 0.0 }
 0x774   :  { %1681 = vadd.xlane.f32.xlu0 %v1680_v24  ;;  %4442 = vmatprep.subr.bf16.mxu1 %v4441_v44 }
 0x775   :  { %4444 = vmatpush3.bf16.msra.mxu1 %v4441_v44 }
 0x776   :  { %4446 = vmatprep.subr.bf16.mxu1 %v4445_v35 }
 0x779   :  { %4448 = vmatpush3.bf16.msra.mxu1 %v4445_v35 }
 0x800   :  { %v1685_v25 = vpop.xlane.xlu1 %1684 }
 0x801   :  { %v1688_v26 = vmul.f32 0.03125, %v1685_v25  ;;  %v1682_v27 = vpop.xlane.xlu0 %1681 }
 0x802   :  { %v1687_v28 = vmul.f32 0.03125, %v1682_v27 }
 0x803   :  { %v1690_v31 = vsub.f32 %v1677_v23, %v1688_v26 }
 0x804   :  { %v1689_v32 = vsub.f32 %v1676_v38, %v1687_v28 }
 0x805   :  { %v1692_v43 = vmul.f32 %v1690_v31, %v1690_v31 }
 0x806   :  { %v1691_v33 = vmul.f32 %v1689_v32, %v1689_v32 }
 0x807   :  { %v1696_v30 = vsel %vm145_vm3, %v1692_v43, 0.0 }
 0x808   :  { %v1693_v40 = vsel %vm145_vm3, %v1691_v33, 0.0 }
 0x809   :  { %1694 = vadd.xlane.f32.xlu0 %v1693_v40 }
 0x80d   :  { %1697 = vadd.xlane.f32.xlu0 %v1696_v30 }
 0x896   :  { %v1695_v41 = vpop.xlane.xlu0 %1694 }
 0x897   :  { %v1699_v36 = vmul.f32 0.03125, %v1695_v41 }
 0x899   :  { %v1701_v45 = vadd.f32 1e-05, %v1699_v36 }
 0x89a   :  { %v1698_v46 = vpop.xlane.xlu0 %1697 }
 0x89b   :  { %4554 = vrsqrt.f32 %v1701_v45  ;;  %v1700_v47 = vmul.f32 0.03125, %v1698_v46 }
 0x89d   :  { %v1702_v48 = vadd.f32 1e-05, %v1700_v47 }
 0x89f   :  { %4556 = vrsqrt.f32 %v1702_v48 }
 0x8a5   :  { %v4555_v49 = vpop.eup %4554 }
 0x8a6   :  { %v1705_v51 = vmul.f32 %v4555_v49, %v1689_v32 }
 0x8a8   :  { %v1711_v54 = vmul.f32 %v3951_v50, %v1705_v51 }
 0x8a9   :  { %v4557_v55 = vpop.eup %4556 }
 0x8aa   :  { %v1706_v56 = vmul.f32 %v4557_v55, %v1690_v31  ;;  %v4941_v57 = vadd.f32 %v3952_v53, %v1711_v54  ;;  %v4684_v54 = vmov -1.0  }
 0x8ac   :  { %v1712_v58 = vmul.f32 %v3951_v50, %v1706_v56  ;;  %4259 = vmatprep.mubr.msk.f32.mxu1 %vm145_vm3, %v4941_v57 }
 0x8ae   :  { %v4945_v59 = vadd.f32 %v3952_v53, %v1712_v58 }
 0x8b0   :  { %4260 = vmatmul.mubr.msk.f32.vlgmr.msra.gmra.mrb[22].mxu1 %vm145_vm3, %v4945_v59 }
 0x983   :  { %v4261_v9 = vpop.f32.mrb[22].mxu1 }
 0x984   :  { %v1806_v10 = vadd.f32 %v4261_v9, %v3953_v8  ;;  %v1800_v11 = vpop.f32.mrb[23].mxu1 }
 0x985   :  { %v1801_v12 = vadd.f32 %v3953_v8, %v1800_v11 }
 0x986   :  { %v1812_v13 = vmul.f32 0.70710677, %v1806_v10  ;;  %v1810_v1 = vmul.f32 0.5, %v1806_v10 }
 0x987   :  { %v1811_v14 = vmul.f32 0.70710677, %v1801_v12  ;;  %v1809_v63 = vmul.f32 0.5, %v1801_v12 }
 0x988   :  { %v1818_v15 = vand.u32 2147483647, %v1812_v13  ;;  %vm1814_vm9 = vcmp.ge.f32.partialorder %v1812_v13, 0.0 }
 0x989   :  { %v1817_v17 = vand.u32 2147483647, %v1811_v14  ;;  %vm1813_vm10 = vcmp.ge.f32.partialorder %v1811_v14, 0.0  ;;  %v1816_v55 = vsel %vm1814_vm9, 1.0, %v4684_v54 }
 0x98a   :  { %v1820_v18 = vmul.f32 0.3275911, %v1818_v15  ;;  %v1846_v22 = vsub.f32 0.0, %v1818_v15  ;;  %v1815_v60 = vsel %vm1813_vm10, 1.0, %v4684_v54 }
 0x98b   :  { %v1819_v19 = vmul.f32 0.3275911, %v1817_v17  ;;  %v1845_v23 = vsub.f32 0.0, %v1817_v17 }
 0x98c   :  { %v1822_v20 = vadd.f32 1.0, %v1820_v18  ;;  %v1848_v42 = vmul.f32 %v1846_v22, %v1818_v15 }
 0x98d   :  { %v1821_v21 = vadd.f32 1.0, %v1819_v19  ;;  %v1847_v26 = vmul.f32 %v1845_v23, %v1817_v17  ;;  %v2001_v23 = vld [vmem:[#allocation2 + $0x140] sm:$0xff] }
 0x98e   :  { %4558 = vrcp.f32 %v1822_v20  ;;  %v1851_v31 = vmul.f32 1.442695, %v1848_v42  ;;  %v2002_v42 = vld [vmem:[#allocation2 + $0x148] sm:$0xff] }
 0x98f   :  { %4560 = vrcp.f32 %v1821_v21  ;;  %v1849_v40 = vmul.f32 1.442695, %v1847_v26 }
 0x990   :  { %4562 = vpow2.f32 %v1851_v31 }
 0x991   :  { %4564 = vpow2.f32 %v1849_v40 }
 0x998   :  { %v4559_v38 = vpop.eup %4558 }
 0x999   :  { %v4561_v24 = vpop.eup %4560  ;;  %v1828_v25 = vmul.f32 1.0614054, %v4559_v38 }
 0x99a   :  { %v1827_v27 = vmul.f32 1.0614054, %v4561_v24  ;;  %v4563_v47 = vpop.eup %4562 }
 0x99b   :  { %v1830_v28 = vadd.f32 -1.4531521, %v1828_v25  ;;  %v4565_v49 = vpop.eup %4564 }
 0x99c   :  { %v1829_v32 = vadd.f32 -1.4531521, %v1827_v27 }
 0x99d   :  { %v1832_v33 = vmul.f32 %v4559_v38, %v1830_v28 }
 0x99e   :  { %v1831_v43 = vmul.f32 %v4561_v24, %v1829_v32 }
 0x99f   :  { %v1834_v30 = vadd.f32 1.4214138, %v1832_v33 }
 0x9a0   :  { %v1833_v29 = vadd.f32 1.4214138, %v1831_v43  ;;  %v3959_v43 = vld [vmem:[#allocation2 + $0x128] ss:$0 sm:$0xff] }
 0x9a1   :  { %v1836_v34 = vmul.f32 %v4559_v38, %v1834_v30 }
 0x9a2   :  { %v1835_v44 = vmul.f32 %v4561_v24, %v1833_v29 }
 0x9a3   :  { %v1838_v37 = vadd.f32 -0.28449672, %v1836_v34 }
 0x9a4   :  { %v1837_v39 = vadd.f32 -0.28449672, %v1835_v44  ;;  %v3960_v44 = vld [vmem:[#allocation2 + $0x130] ss:$0 sm:$0xff] }
 0x9a5   :  { %v1840_v35 = vmul.f32 %v4559_v38, %v1838_v37 }
 0x9a6   :  { %v1839_v41 = vmul.f32 %v4561_v24, %v1837_v39 }
 0x9a7   :  { %v1842_v36 = vadd.f32 0.2548296, %v1840_v35 }
 0x9a8   :  { %v1841_v45 = vadd.f32 0.2548296, %v1839_v41 }
 0x9a9   :  { %v1844_v46 = vmul.f32 %v4559_v38, %v1842_v36  ;;  %v3961_v36 = vld [vmem:[#allocation2 + $0x158] ss:$0 sm:$0xff] }
 0x9aa   :  { %v1843_v48 = vmul.f32 %v4561_v24, %v1841_v45  ;;  %v2003_v24 = vld [vmem:[#allocation2 + $0x150] sm:$0xff] }
 0x9ab   :  { %v1854_v50 = vmul.f32 %v4563_v47, %v1844_v46  ;;  %v4469_v25 = vpack.c.bf16 %v2003_v24, %v2002_v42 }
 0x9ac   :  { %v1853_v51 = vmul.f32 %v4565_v49, %v1843_v48 }
 0x9ad   :  { %v1856_v53 = vsub.f32 1.0, %v1854_v50 }
 0x9ae   :  { %v1855_v56 = vsub.f32 1.0, %v1853_v51 }
 0x9af   :  { %v1858_v58 = vmul.f32 %v1856_v53, %v1816_v55 }
 0x9b0   :  { %v1857_v61 = vmul.f32 %v1855_v56, %v1815_v60 }
 0x9b1   :  { %v1860_v62 = vadd.f32 1.0, %v1858_v58 }
 0x9b2   :  { %v1859_v0 = vadd.f32 1.0, %v1857_v61 }
 0x9b3   :  { %v1862_v3 = vmul.f32 %v1860_v62, %v1810_v1 }
 0x9b4   :  { %v1861_v2 = vmul.f32 %v1859_v0, %v1809_v63 }
 0x9b6   :  { %4278 = vmatprep.mubr.msk.f32.mxu0 %vm1876_vm11, %v1861_v2 }
 0x9b7   :  { %4279 = vmatmul.mubr.msk.f32.vlgmr.msra.gmra.mrb[16].mxu0 %vm1876_vm11, %v1862_v3 }
 0x9b8   :  { %4304 = vmatprep.mubr.msk.f32.mxu0 %vm4675_vm4, %v4674_v16 }
 0xa8a   :  { %v4280_v5 = vpop.f32.mrb[16].mxu0 }
 0xa8b   :  { %v1955_v6 = vadd.f32 %v4280_v5, %v3956_v4  ;;  %v1949_v7 = vpop.f32.mrb[17].mxu0 }
 0xa8c   :  { %v1950_v8 = vadd.f32 %v3956_v4, %v1949_v7 }
 0xa8d   :  { %v1959_v9 = vadd.f32 %v1955_v6, %v4945_v59 }
 0xa8e   :  { %v1958_v11 = vadd.f32 %v1950_v8, %v4941_v57  ;;  %v2000_v57 = vld [vmem:[#allocation2 + $0x138] sm:$0xff] }
 0xa8f   :  { %v1965_v10 = vsel %vm145_vm3, %v1959_v9, 0.0  ;;  %v4465_v38 = vpack.c.bf16 %v2001_v23, %v2000_v57 }
 0xa90   :  { %1966 = vadd.xlane.f32.xlu0 %v1965_v10  ;;  %v1962_v12 = vsel %vm145_vm3, %v1958_v11, 0.0 }
 0xa91   :  { %1963 = vadd.xlane.f32.xlu1 %v1962_v12  ;;  %4466 = vmatprep.subr.bf16.mxu1 %v4465_v38 }
 0xa92   :  { %4468 = vmatpush3.bf16.msra.mxu1 %v4465_v38 }
 0xa93   :  { %4470 = vmatprep.subr.bf16.mxu1 %v4469_v25 }
 0xa96   :  { %4472 = vmatpush3.bf16.msra.mxu1 %v4469_v25 }
 0xa97   :  { %4292 = vmatprep.subr.mxu1 %v4674_v16 }
 0xb1d   :  { %v1967_v13 = vpop.xlane.xlu0 %1966 }
 0xb1e   :  { %v1969_v14 = vmul.f32 0.03125, %v1967_v13  ;;  %v1964_v15 = vpop.xlane.xlu1 %1963 }
 0xb1f   :  { %v1968_v17 = vmul.f32 0.03125, %v1964_v15 }
 0xb20   :  { %v1971_v18 = vsub.f32 %v1959_v9, %v1969_v14 }
 0xb21   :  { %v1970_v19 = vsub.f32 %v1958_v11, %v1968_v17 }
 0xb22   :  { %v1973_v20 = vmul.f32 %v1971_v18, %v1971_v18 }
 0xb23   :  { %v1972_v21 = vmul.f32 %v1970_v19, %v1970_v19 }
 0xb24   :  { %v1977_v22 = vsel %vm145_vm3, %v1973_v20, 0.0 }
 0xb25   :  { %1978 = vadd.xlane.f32.xlu0 %v1977_v22  ;;  %v1974_v59 = vsel %vm145_vm3, %v1972_v21, 0.0 }
 0xb26   :  { %1975 = vadd.xlane.f32.xlu1 %v1974_v59 }
 0xbb2   :  { %v1979_v26 = vpop.xlane.xlu0 %1978 }
 0xbb3   :  { %v1981_v27 = vmul.f32 0.03125, %v1979_v26  ;;  %v1976_v28 = vpop.xlane.xlu1 %1975 }
 0xbb4   :  { %v1980_v31 = vmul.f32 0.03125, %v1976_v28 }
 0xbb5   :  { %v1983_v32 = vadd.f32 1e-05, %v1981_v27 }
 0xbb6   :  { %v1982_v33 = vadd.f32 1e-05, %v1980_v31 }
 0xbb7   :  { %4566 = vrsqrt.f32 %v1983_v32 }
 0xbb8   :  { %4568 = vrsqrt.f32 %v1982_v33 }
 0xbc1   :  { %v4567_v40 = vpop.eup %4566 }
 0xbc2   :  { %v4569_v30 = vpop.eup %4568  ;;  %v1987_v29 = vmul.f32 %v4567_v40, %v1971_v18 }
 0xbc3   :  { %v1986_v34 = vmul.f32 %v4569_v30, %v1970_v19 }
 0xbc4   :  { %v1993_v37 = vmul.f32 %v3959_v43, %v1987_v29 }
 0xbc5   :  { %v1992_v39 = vmul.f32 %v3959_v43, %v1986_v34 }
 0xbc6   :  { %v4965_v41 = vadd.f32 %v3960_v44, %v1993_v37 }
 0xbc7   :  { %v4963_v35 = vadd.f32 %v3960_v44, %v1992_v39 }
 0xbc9   :  { %4289 = vmatprep.mubr.msk.f32.mxu1 %vm145_vm3, %v4963_v35 }
 0xbca   :  { %4290 = vmatmul.mubr.msk.f32.vlgmr.msra.gmra.mrb[24].mxu1 %vm145_vm3, %v4965_v41 }
 0xbcb   :  { %4294 = vmatprep.mubr.msk.f32.mxu1 %vm4675_vm4, %v4674_v16 }
 0xc9d   :  { %v4291_v45 = vpop.f32.mrb[24].mxu1 }
 0xc9e   :  { %v4973_v46 = vadd.f32 %v4291_v45, %v3961_v36  ;;  %v2081_v47 = vpop.f32.mrb[25].mxu1 }
 0xc9f   :  { %v4975_v48 = vadd.f32 %v3961_v36, %v2081_v47 }
 0xca0   :  { %2094 = vrot.lane.b32.xlu0 %v4973_v46, %s4677_s1 }
 0xca1   :  { %2092 = vrot.lane.b32.xlu1 %v4975_v48, %s4677_s1 }
 0xca4   :  { %2100 = vrot.lane.b32.xlu0 %v4975_v48, %s4678_s27 }
 0xca5   :  { %2096 = vrot.lane.b32.xlu1 %v4975_v48, %s4676_s0 }
 0xca8   :  { %2104 = vrot.lane.b32.xlu0 %v4975_v48, %s4679_s28 }
 0xca9   :  { %2098 = vrot.lane.b32.xlu1 %v4973_v46, %s4676_s0 }
 0xcad   :  { %2102 = vrot.lane.b32.xlu1 %v4973_v46, %s4678_s27 }
 0xcb1   :  { %2180 = vrot.lane.b32.xlu1 %v4973_v46, %s4679_s28 }
 0xd12   :  { %v4993_v49 = vpop.permute.xlu0 %2094 }
 0xd13   :  { %2332 = vrot.lane.b32.xlu1 %v4993_v49, %s4679_s28  ;;  %v4997_v50 = vpop.permute.xlu1 %2092 }
 0xd14   :  { %2256 = vrot.lane.b32.xlu0 %v4997_v50, %s4679_s28 }
 0xd16   :  { %v5001_v51 = vpop.permute.xlu0 %2100 }
 0xd17   :  { %v5003_v53 = vpop.permute.xlu1 %2096 }
 0xd18   :  { %2408 = vrot.lane.b32.xlu0 %v5003_v53, %s4679_s28 }
 0xd1a   :  { %v2105_v55 = vpop.permute.xlu0 %2104 }
 0xd1b   :  { %4293 = vmatpush3.xpose.msk.msra.mxu1 %vm243_vm5, %v2105_v55  ;;  %v5008_v56 = vpop.permute.xlu1 %2098 }
 0xd1c   :  { %2560 = vrot.lane.b32.xlu0 %v5001_v51, %s4679_s28  ;;  %2484 = vrot.lane.b32.xlu1 %v5008_v56, %s4679_s28 }
 0xd1d   :  { %4297 = vmatprep.subr.mxu1 %v4674_v16 }
 0xd1e   :  { %4295 = vmatmul.mubr.msk.f32.vlgmr.msra.gmra.mrb[26].mxu1 %vm243_vm5, %v4975_v48 }
 0xd1f   :  { %v5017_v58 = vpop.permute.xlu1 %2102  ;;  %4299 = vmatprep.mubr.msk.f32.mxu1 %vm4675_vm4, %v4674_v16 }
 0xd20   :  { %2636 = vrot.lane.b32.xlu1 %v5017_v58, %s4679_s28 }
 0xd23   :  { %v2181_v60 = vpop.permute.xlu1 %2180 }
 0xd24   :  { %4298 = vmatpush3.xpose.msk.msra.mxu1 %vm243_vm5, %v2181_v60 }
 0xd25   :  { %4307 = vmatprep.subr.mxu1 %v4674_v16 }
 0xd27   :  { %4300 = vmatmul.mubr.msk.f32.vlgmr.msra.gmra.mrb[28].mxu1 %vm243_vm5, %v4973_v46 }
 0xd28   :  { %4309 = vmatprep.mubr.msk.f32.mxu1 %vm4675_vm4, %v4674_v16 }
 0xd85   :  { %v2333_v61 = vpop.permute.xlu1 %2332 }
 0xd86   :  { %v2257_v62 = vpop.permute.xlu0 %2256  ;;  %4308 = vmatpush3.xpose.msk.msra.mxu1 %vm243_vm5, %v2333_v61 }
 0xd87   :  { %4303 = vmatpush3.xpose.msk.msra.mxu0 %vm243_vm5, %v2257_v62  ;;  %4317 = vmatprep.subr.mxu1 %v4674_v16 }
 0xd88   :  { %4312 = vmatprep.subr.mxu0 %v4674_v16 }
 0xd89   :  { %4310 = vmatmul.mubr.msk.f32.vlgmr.msra.gmra.mrb[30].mxu1 %vm243_vm5, %v4993_v49 }
 0xd8a   :  { %4305 = vmatmul.mubr.msk.f32.vlgmr.msra.gmra.mrb[18].mxu0 %vm243_vm5, %v4997_v50  ;;  %v2409_v63 = vpop.permute.xlu0 %2408  ;;  %4319 = vmatprep.mubr.msk.f32.mxu1 %vm4675_vm4, %v4674_v16 }
 0xd8b   :  { %4313 = vmatpush3.xpose.msk.msra.mxu0 %vm243_vm5, %v2409_v63  ;;  %4314 = vmatprep.mubr.msk.f32.mxu0 %vm4675_vm4, %v4674_v16 }
 0xd8c   :  { %4322 = vmatprep.subr.mxu0 %v4674_v16 }
 0xd8e   :  { %4315 = vmatmul.mubr.msk.f32.vlgmr.msra.gmra.mrb[20].mxu0 %vm243_vm5, %v5003_v53  ;;  %v2561_v0 = vpop.permute.xlu0 %2560  ;;  %v2485_v1 = vpop.permute.xlu1 %2484 }
 0xd8f   :  { %4318 = vmatpush3.xpose.msk.msra.mxu1 %vm243_vm5, %v2485_v1  ;;  %4323 = vmatpush3.xpose.msk.msra.mxu0 %vm243_vm5, %v2561_v0 }
 0xd90   :  { %4324 = vmatprep.mubr.msk.f32.mxu0 %vm4675_vm4, %v4674_v16  ;;  %4327 = vmatprep.subr.mxu1 %v4674_v16 }
 0xd91   :  { %4332 = vmatprep.subr.mxu0 %v4674_v16 }
 0xd92   :  { %4320 = vmatmul.mubr.msk.f32.vlgmr.msra.gmra.mrb[32].mxu1 %vm243_vm5, %v5008_v56  ;;  %4325 = vmatmul.mubr.msk.f32.vlgmr.msra.gmra.mrb[22].mxu0 %vm243_vm5, %v5001_v51  ;;  %v2637_v2 = vpop.permute.xlu1 %2636 }
 0xd93   :  { %4328 = vmatpush3.xpose.msk.msra.mxu1 %vm243_vm5, %v2637_v2  ;;  %4329 = vmatprep.mubr.msk.f32.mxu1 %vm4675_vm4, %v4674_v16 }
 0xd94   :  { %4337 = vmatprep.subr.mxu1 %v4674_v16  ;;  %4334 = vmatprep.mubr.msk.f32.mxu0 %vm4675_vm4, %v4674_v16 }
 0xd96   :  { %4330 = vmatmul.mubr.msk.f32.vlgmr.msra.gmra.mrb[34].mxu1 %vm243_vm5, %v5017_v58 }
 0xd97   :  { %4339 = vmatprep.mubr.msk.f32.mxu1 %vm4675_vm4, %v4674_v16 }
 0xdf1   :  { %v2176_v3 = vpop.f32.mrb[26].mxu1 }
 0xdf2   :  { %v2177_v4 = vadd.f32 %v2176_v3, %v4837_v52  ;;  %v4296_v5 = vpop.f32.mrb[27].mxu1 }
 0xdf4   :  { %v2712_v6 = vmul.f32 0.35355338, %v2177_v4 }
 0xdf6   :  { %v2720_v7 = vsel %vm243_vm5, %v2712_v6, -inf }
 0xdf7   :  { %2721 = vmax.xlane.f32.xlu0 %v2720_v7 }
 0xdfa   :  { %v2252_v8 = vpop.f32.mrb[28].mxu1 }
 0xdfb   :  { %v2253_v9 = vadd.f32 %v2252_v8, %v4837_v52  ;;  %v4301_v11 = vpop.f32.mrb[29].mxu1 }
 0xdfd   :  { %v2713_v10 = vmul.f32 0.35355338, %v2253_v9 }
 0xdff   :  { %v2723_v12 = vsel %vm243_vm5, %v2713_v10, -inf }
 0xe00   :  { %2724 = vmax.xlane.f32.xlu1 %v2723_v12 }
 0xe5c   :  { %v2404_v13 = vpop.f32.mrb[30].mxu1 }
 0xe5d   :  { %v2328_v14 = vpop.f32.mrb[18].mxu0  ;;  %v4311_v15 = vpop.f32.mrb[31].mxu1  ;;  %v2405_v17 = vadd.f32 %v2404_v13, %v4837_v52 }
 0xe5e   :  { %v2329_v18 = vadd.f32 %v2328_v14, %v4837_v52  ;;  %v4306_v19 = vpop.f32.mrb[19].mxu0 }
 0xe5f   :  { %v2715_v22 = vmul.f32 0.35355338, %v2405_v17 }
 0xe60   :  { %v2714_v20 = vmul.f32 0.35355338, %v2329_v18 }
 0xe61   :  { %v2480_v21 = vpop.f32.mrb[20].mxu0  ;;  %v2729_v32 = vsel %vm243_vm5, %v2715_v22, -inf }
 0xe62   :  { %v2481_v59 = vadd.f32 %v2480_v21, %v4837_v52  ;;  %v4316_v57 = vpop.f32.mrb[21].mxu0  ;;  %v2726_v23 = vsel %vm243_vm5, %v2714_v20, -inf }
 0xe63   :  { %2727 = vmax.xlane.f32.xlu0 %v2726_v23 }
 0xe64   :  { %v2716_v38 = vmul.f32 0.35355338, %v2481_v59 }
 0xe65   :  { %v2556_v42 = vpop.f32.mrb[32].mxu1  ;;  %v2632_v24 = vpop.f32.mrb[22].mxu0 }
 0xe66   :  { %v2557_v25 = vadd.f32 %v2556_v42, %v4837_v52  ;;  %v2633_v26 = vadd.f32 %v2632_v24, %v4837_v52  ;;  %v4321_v27 = vpop.f32.mrb[33].mxu1  ;;  %v4326_v28 = vpop.f32.mrb[23].mxu0  ;;  %v2732_v31 = vsel %vm243_vm5, %v2716_v38, -inf }
 0xe67   :  { %2733 = vmax.xlane.f32.xlu1 %v2732_v31  ;;  %2730 = vmax.xlane.f32.xlu0 %v2729_v32 }
 0xe68   :  { %v2717_v33 = vmul.f32 0.35355338, %v2557_v25  ;;  %v2718_v40 = vmul.f32 0.35355338, %v2633_v26 }
 0xe69   :  { %v2708_v43 = vpop.f32.mrb[34].mxu1 }
 0xe6a   :  { %v2709_v30 = vadd.f32 %v2708_v43, %v4837_v52  ;;  %v4331_v29 = vpop.f32.mrb[35].mxu1  ;;  %v2738_v34 = vsel %vm243_vm5, %v2718_v40, -inf  ;;  %v2735_v44 = vsel %vm243_vm5, %v2717_v33, -inf }
 0xe6b   :  { %2739 = vmax.xlane.f32.xlu1 %v2738_v34  ;;  %2736 = vmax.xlane.f32.xlu0 %v2735_v44 }
 0xe6c   :  { %v2719_v37 = vmul.f32 0.35355338, %v2709_v30 }
 0xe6e   :  { %v2741_v39 = vsel %vm243_vm5, %v2719_v37, -inf }
 0xe6f   :  { %2742 = vmax.xlane.f32.xlu0 %v2741_v39 }
 0xe7c   :  { %2808 = vrot.lane.b32.xlu1 %v4975_v48, %s4681_s29 }
 0xe80   :  { %2960 = vrot.lane.b32.xlu1 %v4997_v50, %s4681_s29 }
 0xe84   :  { %3036 = vrot.lane.b32.xlu1 %v4993_v49, %s4681_s29  ;;  %v2722_v45 = vpop.xlane.xlu0 %2721 }
 0xe85   :  { %2884 = vrot.lane.b32.xlu0 %v4973_v46, %s4681_s29  ;;  %v2744_v47 = vsub.f32 %v2712_v6, %v2722_v45 }
 0xe87   :  { %v2752_v55 = vmul.f32 1.442695, %v2744_v47 }
 0xe88   :  { %3188 = vrot.lane.b32.xlu1 %v5008_v56, %s4681_s29 }
 0xe89   :  { %3112 = vrot.lane.b32.xlu0 %v5003_v53, %s4681_s29 }
 0xe8d   :  { %v2725_v52 = vpop.xlane.xlu1 %2724 }
 0xe8e   :  { %v2745_v36 = vsub.f32 %v2713_v10, %v2725_v52 }
 0xe90   :  { %v2754_v48 = vmul.f32 1.442695, %v2745_v36 }
 0xe92   :  { %4570 = vpow2.f32 %v2754_v48 }
 0xe93   :  { %4572 = vpow2.f32 %v2752_v55 }
 0xe9c   :  { %v5093_v50 = vpop.eup %4570 }
 0xe9d   :  { %v2771_v49 = vsel %vm243_vm5, %v5093_v50, 0.0  ;;  %v5097_v46 = vpop.eup %4572 }
 0xe9e   :  { %v2768_v56 = vsel %vm243_vm5, %v5097_v46, 0.0 }
 0xea8   :  { %2772 = vadd.xlane.f32.xlu0 %v2771_v49 }
 0xeac   :  { %2769 = vadd.xlane.f32.xlu1 %v2768_v56 }
 0xef0   :  { %v2728_v53 = vpop.xlane.xlu0 %2727 }
 0xef1   :  { %v2746_v60 = vsub.f32 %v2714_v20, %v2728_v53 }
 0xef3   :  { %v2756_v61 = vmul.f32 1.442695, %v2746_v60 }
 0xef4   :  { %v2731_v62 = vpop.xlane.xlu0 %2730  ;;  %v2734_v63 = vpop.xlane.xlu1 %2733 }
 0xef5   :  { %4574 = vpow2.f32 %v2756_v61  ;;  %v2747_v0 = vsub.f32 %v2715_v22, %v2731_v62  ;;  %v2748_v1 = vsub.f32 %v2716_v38, %v2734_v63 }
 0xef7   :  { %v2758_v2 = vmul.f32 1.442695, %v2747_v0  ;;  %v2760_v3 = vmul.f32 1.442695, %v2748_v1  ;;  %v3446_v1 = vld [vmem:[#allocation2 + $0x160] sm:$0xff] }
 0xef8   :  { %v2737_v4 = vpop.xlane.xlu0 %2736  ;;  %v2740_v5 = vpop.xlane.xlu1 %2739 }
 0xef9   :  { %4576 = vpow2.f32 %v2758_v2  ;;  %v2749_v6 = vsub.f32 %v2717_v33, %v2737_v4  ;;  %v2750_v7 = vsub.f32 %v2718_v40, %v2740_v5  ;;  %v3447_v2 = vld [vmem:[#allocation2 + $0x168] sm:$0xff]  ;;  %v3448_v4 = vld [vmem:[#allocation2 + $0x170] sm:$0xff]  ;;  %v3449_v5 = vld [vmem:[#allocation2 + $0x178] sm:$0xff] }
 0xefa   :  { %4578 = vpow2.f32 %v2760_v3  ;;  %v4473_v3 = vpack.c.bf16 %v3447_v2, %v3446_v1  ;;  %v3992_v2 = vld [vmem:[#allocation2 + $0x190] ss:$0 sm:$0xff] }
 0xefb   :  { %v2762_v8 = vmul.f32 1.442695, %v2749_v6  ;;  %v2764_v9 = vmul.f32 1.442695, %v2750_v7  ;;  %v4477_v6 = vpack.c.bf16 %v3449_v5, %v3448_v4 }
 0xefc   :  { %v2743_v11 = vpop.xlane.xlu0 %2742  ;;  %v2809_v10 = vpop.permute.xlu1 %2808 }
 0xefd   :  { %4580 = vpow2.f32 %v2762_v8  ;;  %v2751_v12 = vsub.f32 %v2719_v37, %v2743_v11  ;;  %4333 = vmatpush3.msra.mxu0 %v2809_v10 }
 0xefe   :  { %4582 = vpow2.f32 %v2764_v9  ;;  %4342 = vmatprep.subr.mxu0 %v4674_v16 }
 0xeff   :  { %v4575_v13 = vpop.eup %4574  ;;  %v2766_v14 = vmul.f32 1.442695, %v2751_v12 }
 0xf00   :  { %v2885_v15 = vpop.permute.xlu0 %2884  ;;  %v2774_v17 = vsel %vm243_vm5, %v4575_v13, 0.0  ;;  %v2961_v24 = vpop.permute.xlu1 %2960 }
 0xf01   :  { %4584 = vpow2.f32 %v2766_v14  ;;  %2775 = vadd.xlane.f32.xlu1 %v2774_v17  ;;  %4338 = vmatpush3.msra.mxu1 %v2885_v15 }
 0xf02   :  { %4347 = vmatprep.subr.mxu1 %v4674_v16 }
 0xf03   :  { %v4577_v18 = vpop.eup %4576 }
 0xf04   :  { %v4579_v19 = vpop.eup %4578  ;;  %v2777_v20 = vsel %vm243_vm5, %v4577_v18, 0.0  ;;  %v3037_v25 = vpop.permute.xlu1 %3036 }
 0xf05   :  { %2778 = vadd.xlane.f32.xlu0 %v2777_v20  ;;  %v2780_v21 = vsel %vm243_vm5, %v4579_v19, 0.0  ;;  %v3113_v26 = vpop.permute.xlu0 %3112 }
 0xf06   :  { %2781 = vadd.xlane.f32.xlu1 %v2780_v21 }
 0xf07   :  { %v4581_v22 = vpop.eup %4580 }
 0xf08   :  { %v4583_v59 = vpop.eup %4582  ;;  %v2783_v57 = vsel %vm243_vm5, %v4581_v22, 0.0  ;;  %v3189_v27 = vpop.permute.xlu1 %3188 }
 0xf09   :  { %2784 = vadd.xlane.f32.xlu0 %v2783_v57  ;;  %v2786_v23 = vsel %vm243_vm5, %v4583_v59, 0.0 }
 0xf0a   :  { %2787 = vadd.xlane.f32.xlu1 %v2786_v23 }
 0xf0b   :  { %v5108_v38 = vpop.eup %4584 }
 0xf0c   :  { %v2789_v42 = vsel %vm243_vm5, %v5108_v38, 0.0 }
 0xf0d   :  { %2790 = vadd.xlane.f32.xlu0 %v2789_v42 }
 0xf1b   :  { %3340 = vrot.lane.b32.xlu1 %v5017_v58, %s4681_s29 }
 0xf23   :  { %3264 = vrot.lane.b32.xlu0 %v5001_v51, %s4681_s29 }
 0xf35   :  { %v2773_v28 = vpop.xlane.xlu0 %2772 }
 0xf36   :  { %4586 = vrcp.f32 %v2773_v28 }
 0xf39   :  { %v2770_v31 = vpop.xlane.xlu1 %2769 }
 0xf3a   :  { %4588 = vrcp.f32 %v2770_v31 }
 0xf40   :  { %v4587_v32 = vpop.eup %4586 }
 0xf41   :  { %v2801_v33 = vmul.f32 %v4587_v32, %v5093_v50 }
 0xf43   :  { %4340 = vmatmul.mubr.msk.f32.vlgmr.msra.gmra.mrb[36].mxu1 %vm243_vm5, %v2801_v33 }
 0xf44   :  { %v4589_v40 = vpop.eup %4588  ;;  %4348 = vmatpush3.msra.mxu1 %v3037_v25  ;;  %4349 = vmatprep.mubr.msk.f32.mxu1 %vm4675_vm4, %v4674_v16 }
 0xf45   :  { %v2800_v51 = vmul.f32 %v4589_v40, %v5097_v46  ;;  %4357 = vmatprep.subr.mxu1 %v4674_v16 }
 0xf47   :  { %4335 = vmatmul.mubr.msk.f32.vlgmr.msra.gmra.mrb[24].mxu0 %vm243_vm5, %v2800_v51 }
 0xf48   :  { %4343 = vmatpush3.msra.mxu0 %v2961_v24  ;;  %4344 = vmatprep.mubr.msk.f32.mxu0 %vm4675_vm4, %v4674_v16 }
 0xf49   :  { %4352 = vmatprep.subr.mxu0 %v4674_v16 }
 0xf8e   :  { %v2776_v58 = vpop.xlane.xlu1 %2775 }
 0xf8f   :  { %4590 = vrcp.f32 %v2776_v58 }
 0xf92   :  { %v2779_v43 = vpop.xlane.xlu0 %2778 }
 0xf93   :  { %4592 = vrcp.f32 %v2779_v43  ;;  %v2782_v30 = vpop.xlane.xlu1 %2781 }
 0xf94   :  { %4594 = vrcp.f32 %v2782_v30 }
 0xf96   :  { %v2785_v29 = vpop.xlane.xlu0 %2784 }
 0xf97   :  { %4596 = vrcp.f32 %v2785_v29  ;;  %v2788_v34 = vpop.xlane.xlu1 %2787 }
 0xf98   :  { %4598 = vrcp.f32 %v2788_v34 }
 0xf99   :  { %v4591_v44 = vpop.eup %4590 }
 0xf9a   :  { %v2802_v37 = vmul.f32 %v4591_v44, %v4575_v13  ;;  %v2791_v39 = vpop.xlane.xlu0 %2790 }
 0xf9b   :  { %4600 = vrcp.f32 %v2791_v39  ;;  %v3341_v56 = vpop.permute.xlu1 %3340 }
 0xf9c   :  { %4345 = vmatmul.mubr.msk.f32.vlgmr.msra.gmra.mrb[26].mxu0 %vm243_vm5, %v2802_v37 }
 0xf9d   :  { %v4593_v52 = vpop.eup %4592  ;;  %4353 = vmatpush3.msra.mxu0 %v3113_v26  ;;  %4354 = vmatprep.mubr.msk.f32.mxu0 %vm4675_vm4, %v4674_v16 }
 0xf9e   :  { %v4595_v36 = vpop.eup %4594  ;;  %v2803_v45 = vmul.f32 %v4593_v52, %v4577_v18  ;;  %4362 = vmatprep.subr.mxu0 %v4674_v16  ;;  %v3265_v48 = vpop.permute.xlu0 %3264 }
 0xf9f   :  { %v2804_v47 = vmul.f32 %v4595_v36, %v4579_v19 }
 0xfa0   :  { %4350 = vmatmul.mubr.msk.f32.vlgmr.msra.gmra.mrb[38].mxu1 %vm243_vm5, %v2803_v45 }
 0xfa1   :  { %v4597_v55 = vpop.eup %4596  ;;  %4355 = vmatmul.mubr.msk.f32.vlgmr.msra.gmra.mrb[28].mxu0 %vm243_vm5, %v2804_v47  ;;  %4358 = vmatpush3.msra.mxu1 %v3189_v27  ;;  %v3988_v27 = vld [vmem:[#allocation2 + $0x180] ss:$0 sm:$0xff] }
 0xfa2   :  { %v4599_v50 = vpop.eup %4598  ;;  %v2805_v49 = vmul.f32 %v4597_v55, %v4581_v22  ;;  %4363 = vmatpush3.msra.mxu0 %v3265_v48  ;;  %4359 = vmatprep.mubr.msk.f32.mxu1 %vm4675_vm4, %v4674_v16  ;;  %v3579_v47 = vld [vmem:[#allocation2 + $0x1a0] sm:$0xff]  ;;  %v3580_v55 = vld [vmem:[#allocation2 + $0x1a8] sm:$0xff] }
 0xfa3   :  { %v2806_v46 = vmul.f32 %v4599_v50, %v4583_v59  ;;  %4364 = vmatprep.mubr.msk.f32.mxu0 %vm4675_vm4, %v4674_v16  ;;  %4367 = vmatprep.subr.mxu1 %v4674_v16  ;;  %v3581_v50 = vld [vmem:[#allocation2 + $0x1b0] sm:$0xff] }
 0xfa4   :  { %4360 = vmatmul.mubr.msk.f32.vlgmr.msra.gmra.mrb[40].mxu1 %vm243_vm5, %v2805_v49  ;;  %4474 = vmatprep.subr.bf16.mxu0 %v4473_v3  ;;  %v4485_v49 = vpack.c.bf16 %v3581_v50, %v3580_v55 }
 0xfa5   :  { %v4601_v53 = vpop.eup %4600  ;;  %4365 = vmatmul.mubr.msk.f32.vlgmr.msra.gmra.mrb[30].mxu0 %vm243_vm5, %v2806_v46  ;;  %4368 = vmatpush3.msra.mxu1 %v3341_v56 }
 0xfa6   :  { %v2807_v60 = vmul.f32 %v4601_v53, %v5108_v38  ;;  %4369 = vmatprep.mubr.msk.f32.mxu1 %vm4675_vm4, %v4674_v16  ;;  %4476 = vmatpush3.bf16.msra.mxu0 %v4473_v3 }
 0xfa7   :  { %4478 = vmatprep.subr.bf16.mxu0 %v4477_v6 }
 0xfa8   :  { %4370 = vmatmul.mubr.msk.f32.vlgmr.msra.gmra.mrb[42].mxu1 %vm243_vm5, %v2807_v60 }
 0xfaa   :  { %4480 = vmatpush3.bf16.msra.mxu0 %v4477_v6 }
0x1016   :  { %v2956_v61 = vpop.f32.mrb[36].mxu1 }
0x1017   :  { %v4341_v62 = vpop.f32.mrb[37].mxu1 }
0x101a   :  { %v2880_v63 = vpop.f32.mrb[24].mxu0 }
0x101b   :  { %v4336_v0 = vpop.f32.mrb[25].mxu0 }
0x101c   :  { %v3991_v0 = vld [vmem:[#allocation2 + $0x188] ss:$0 sm:$0xff] }
0x106f   :  { %v3032_v7 = vpop.f32.mrb[26].mxu0 }
0x1070   :  { %3418 = vrot.lane.b32.xlu0 %v3032_v7, %s4672_s20  ;;  %v4346_v16 = vpop.f32.mrb[27].mxu0 }
0x1073   :  { %v3108_v8 = vpop.f32.mrb[38].mxu1 }
0x1074   :  { %v3184_v9 = vpop.f32.mrb[28].mxu0  ;;  %3420 = vrot.lane.b32.xlu1 %v3108_v8, %s4672_s20  ;;  %v4351_v11 = vpop.f32.mrb[39].mxu1  ;;  %v3722_v8 = vld [vmem:[#allocation2 + $0x1c0] sm:$0xff] }
0x1075   :  { %3426 = vrot.lane.b32.xlu0 %v3184_v9, %s4682_s30  ;;  %v4356_v10 = vpop.f32.mrb[29].mxu0  ;;  %v3723_v9 = vld [vmem:[#allocation2 + $0x1c8] sm:$0xff] }
0x1076   :  { %v4489_v11 = vpack.c.bf16 %v3723_v9, %v3722_v8  ;;  %v3724_v10 = vld [vmem:[#allocation2 + $0x1d0] sm:$0xff] }
0x1077   :  { %v3260_v12 = vpop.f32.mrb[40].mxu1 }
0x1078   :  { %v3336_v13 = vpop.f32.mrb[30].mxu0  ;;  %3428 = vrot.lane.b32.xlu1 %v3260_v12, %s4682_s30  ;;  %v4361_v14 = vpop.f32.mrb[41].mxu1  ;;  %4490 = vmatprep.subr.bf16.mxu0 %v4489_v11  ;;  %v3725_v12 = vld [vmem:[#allocation2 + $0x1d8] sm:$0xff] }
0x1079   :  { %3434 = vrot.lane.b32.xlu0 %v3336_v13, %s4683_s3  ;;  %v4366_v15 = vpop.f32.mrb[31].mxu0  ;;  %v4493_v13 = vpack.c.bf16 %v3725_v12, %v3724_v10  ;;  %v3726_v14 = vld [vmem:[#allocation2 + $0x1e0] sm:$0xff] }
0x107a   :  { %v3727_v15 = vld [vmem:[#allocation2 + $0x1e8] sm:$0xff] }
0x107b   :  { %v3412_v17 = vpop.f32.mrb[42].mxu1 }
0x107c   :  { %3436 = vrot.lane.b32.xlu1 %v3412_v17, %s4683_s3  ;;  %v4371_v18 = vpop.f32.mrb[43].mxu1  ;;  %v4497_v17 = vpack.c.bf16 %v3727_v15, %v3726_v14  ;;  %v3996_v14 = vld [vmem:[#allocation2 + $0x200] ss:$0 sm:$0xff] }
0x107d   :  { %v3728_v18 = vld [vmem:[#allocation2 + $0x1f0] sm:$0xff] }
0x10e2   :  { %v3419_v19 = vpop.permute.xlu0 %3418 }
0x10e3   :  { %v3440_v22 = vsel %vm243_vm5, %v2880_v63, %v3419_v19  ;;  %v3729_v19 = vld [vmem:[#allocation2 + $0x1f8] sm:$0xff] }
0x10e6   :  { %v3421_v20 = vpop.permute.xlu1 %3420 }
0x10e7   :  { %v3427_v21 = vpop.permute.xlu0 %3426  ;;  %v3441_v42 = vsel %vm243_vm5, %v2956_v61, %v3421_v20  ;;  %v4501_v20 = vpack.c.bf16 %v3729_v19, %v3728_v18 }
0x10e8   :  { %v3442_v57 = vsel %vm1580_vm7, %v3440_v22, %v3427_v21  ;;  %v3993_v21 = vld [vmem:[#allocation2 + $0x1b8] ss:$0 sm:$0xff] }
0x10ea   :  { %v3429_v59 = vpop.permute.xlu1 %3428 }
0x10eb   :  { %v3435_v23 = vpop.permute.xlu0 %3434  ;;  %v3443_v24 = vsel %vm1580_vm7, %v3441_v42, %v3429_v59 }
0x10ec   :  { %v3444_v38 = vsel %vm1583_vm8, %v3442_v57, %v3435_v23 }
0x10ed   :  { %4380 = vmatprep.mubr.msk.f32.mxu0 %vm145_vm3, %v3444_v38 }
0x10ee   :  { %v3437_v25 = vpop.permute.xlu1 %3436 }
0x10ef   :  { %v3445_v26 = vsel %vm1583_vm8, %v3443_v24, %v3437_v25 }
0x10f0   :  { %4381 = vmatmul.mubr.msk.f32.vlgmr.msra.gmra.mrb[32].mxu0 %vm145_vm3, %v3445_v26 }
0x10f1   :  { %4492 = vmatpush3.bf16.msra.mxu0 %v4489_v11 }
0x10f2   :  { %4494 = vmatprep.subr.bf16.mxu0 %v4493_v13 }
0x10f5   :  { %4496 = vmatpush3.bf16.msra.mxu0 %v4493_v13 }
0x10f6   :  { %4498 = vmatprep.subr.bf16.mxu0 %v4497_v17 }
0x10f9   :  { %4500 = vmatpush3.bf16.msra.mxu0 %v4497_v17 }
0x10fa   :  { %4502 = vmatprep.subr.bf16.mxu0 %v4501_v20 }
0x10fd   :  { %4504 = vmatpush3.bf16.msra.mxu0 %v4501_v20 }
0x11c3   :  { %v4382_v28 = vpop.f32.mrb[32].mxu0 }
0x11c4   :  { %v3533_v31 = vadd.f32 %v4382_v28, %v3988_v27  ;;  %v3527_v32 = vpop.f32.mrb[33].mxu0 }
0x11c5   :  { %v3528_v33 = vadd.f32 %v3988_v27, %v3527_v32 }
0x11c6   :  { %v3537_v40 = vadd.f32 %v3533_v31, %v4965_v41 }
0x11c7   :  { %v3536_v51 = vadd.f32 %v3528_v33, %v4963_v35  ;;  %v3578_v35 = vld [vmem:[#allocation2 + $0x198] sm:$0xff] }
0x11c8   :  { %v3543_v58 = vsel %vm145_vm3, %v3537_v40, 0.0  ;;  %v4481_v48 = vpack.c.bf16 %v3579_v47, %v3578_v35 }
0x11c9   :  { %3544 = vadd.xlane.f32.xlu1 %v3543_v58  ;;  %v3540_v43 = vsel %vm145_vm3, %v3536_v51, 0.0 }
0x11ca   :  { %3541 = vadd.xlane.f32.xlu0 %v3540_v43  ;;  %4482 = vmatprep.subr.bf16.mxu1 %v4481_v48 }
0x11cb   :  { %4484 = vmatpush3.bf16.msra.mxu1 %v4481_v48 }
0x11cc   :  { %4486 = vmatprep.subr.bf16.mxu1 %v4485_v49 }
0x11cf   :  { %4488 = vmatpush3.bf16.msra.mxu1 %v4485_v49 }
0x1256   :  { %v3545_v30 = vpop.xlane.xlu1 %3544 }
0x1257   :  { %v3547_v29 = vmul.f32 0.03125, %v3545_v30  ;;  %v3542_v34 = vpop.xlane.xlu0 %3541 }
0x1258   :  { %v3546_v44 = vmul.f32 0.03125, %v3542_v34 }
0x1259   :  { %v3549_v37 = vsub.f32 %v3537_v40, %v3547_v29 }
0x125a   :  { %v3548_v39 = vsub.f32 %v3536_v51, %v3546_v44 }
0x125b   :  { %v3551_v45 = vmul.f32 %v3549_v37, %v3549_v37 }
0x125c   :  { %v3550_v52 = vmul.f32 %v3548_v39, %v3548_v39 }
0x125d   :  { %v3555_v41 = vsel %vm145_vm3, %v3551_v45, 0.0 }
0x125e   :  { %v3552_v36 = vsel %vm145_vm3, %v3550_v52, 0.0 }
0x125f   :  { %3553 = vadd.xlane.f32.xlu0 %v3552_v36 }
0x1263   :  { %3556 = vadd.xlane.f32.xlu0 %v3555_v41 }
0x12ec   :  { %v3554_v46 = vpop.xlane.xlu0 %3553 }
0x12ed   :  { %v3558_v56 = vmul.f32 0.03125, %v3554_v46 }
0x12ef   :  { %v3560_v53 = vadd.f32 1e-05, %v3558_v56 }
0x12f0   :  { %v3557_v60 = vpop.xlane.xlu0 %3556 }
0x12f1   :  { %4602 = vrsqrt.f32 %v3560_v53  ;;  %v3559_v61 = vmul.f32 0.03125, %v3557_v60 }
0x12f3   :  { %v3561_v62 = vadd.f32 1e-05, %v3559_v61 }
0x12f5   :  { %4604 = vrsqrt.f32 %v3561_v62 }
0x12fb   :  { %v4603_v63 = vpop.eup %4602 }
0x12fc   :  { %v3564_v1 = vmul.f32 %v4603_v63, %v3548_v39 }
0x12fe   :  { %v3570_v3 = vmul.f32 %v3991_v0, %v3564_v1 }
0x12ff   :  { %v4605_v4 = vpop.eup %4604 }
0x1300   :  { %v3565_v5 = vmul.f32 %v4605_v4, %v3549_v37  ;;  %v5163_v6 = vadd.f32 %v3992_v2, %v3570_v3 }
0x1302   :  { %v3571_v7 = vmul.f32 %v3991_v0, %v3565_v5  ;;  %4391 = vmatprep.mubr.msk.f32.mxu1 %vm145_vm3, %v5163_v6 }
0x1304   :  { %v5167_v16 = vadd.f32 %v3992_v2, %v3571_v7 }
0x1306   :  { %4392 = vmatmul.mubr.msk.f32.vlgmr.msra.gmra.mrb[44].mxu1 %vm145_vm3, %v5167_v16 }
0x13d9   :  { %v4393_v22 = vpop.f32.mrb[44].mxu1 }
0x13da   :  { %v3665_v59 = vadd.f32 %v4393_v22, %v3993_v21  ;;  %v3659_v57 = vpop.f32.mrb[45].mxu1 }
0x13db   :  { %v3660_v23 = vadd.f32 %v3993_v21, %v3659_v57 }
0x13dc   :  { %v3671_v38 = vmul.f32 0.70710677, %v3665_v59  ;;  %v3669_v10 = vmul.f32 0.5, %v3665_v59 }
0x13dd   :  { %v3670_v42 = vmul.f32 0.70710677, %v3660_v23  ;;  %v3668_v9 = vmul.f32 0.5, %v3660_v23 }
0x13de   :  { %v3677_v24 = vand.u32 2147483647, %v3671_v38  ;;  %vm3673_vm12 = vcmp.ge.f32.partialorder %v3671_v38, 0.0 }
0x13df   :  { %v3676_v25 = vand.u32 2147483647, %v3670_v42  ;;  %vm3672_vm13 = vcmp.ge.f32.partialorder %v3670_v42, 0.0  ;;  %v3675_v2 = vsel %vm3673_vm12, 1.0, %v4684_v54 }
0x13e0   :  { %v3679_v26 = vmul.f32 0.3275911, %v3677_v24  ;;  %v3705_v32 = vsub.f32 0.0, %v3677_v24  ;;  %v3674_v5 = vsel %vm3672_vm13, 1.0, %v4684_v54 }
0x13e1   :  { %v3678_v27 = vmul.f32 0.3275911, %v3676_v25  ;;  %v3704_v33 = vsub.f32 0.0, %v3676_v25 }
0x13e2   :  { %v3681_v28 = vadd.f32 1.0, %v3679_v26  ;;  %v3707_v51 = vmul.f32 %v3705_v32, %v3677_v24 }
0x13e3   :  { %v3680_v31 = vadd.f32 1.0, %v3678_v27  ;;  %v3706_v30 = vmul.f32 %v3704_v33, %v3676_v25 }
0x13e4   :  { %4606 = vrcp.f32 %v3681_v28  ;;  %v3710_v44 = vmul.f32 1.442695, %v3707_v51 }
0x13e5   :  { %4608 = vrcp.f32 %v3680_v31  ;;  %v3708_v52 = vmul.f32 1.442695, %v3706_v30 }
0x13e6   :  { %4610 = vpow2.f32 %v3710_v44 }
0x13e7   :  { %4612 = vpow2.f32 %v3708_v52 }
0x13ee   :  { %v4607_v40 = vpop.eup %4606 }
0x13ef   :  { %v4609_v58 = vpop.eup %4608  ;;  %v3687_v43 = vmul.f32 1.0614054, %v4607_v40 }
0x13f0   :  { %v3686_v29 = vmul.f32 1.0614054, %v4609_v58  ;;  %v4611_v60 = vpop.eup %4610 }
0x13f1   :  { %v3689_v34 = vadd.f32 -1.4531521, %v3687_v43  ;;  %v4613_v62 = vpop.eup %4612 }
0x13f2   :  { %v3688_v37 = vadd.f32 -1.4531521, %v3686_v29  ;;  %v4000_v29 = vld [vmem:[#allocation2 + $0x210] ss:$0 sm:$0xff] }
0x13f3   :  { %v3691_v39 = vmul.f32 %v4607_v40, %v3689_v34 }
0x13f4   :  { %v3690_v36 = vmul.f32 %v4609_v58, %v3688_v37 }
0x13f5   :  { %v3693_v45 = vadd.f32 1.4214138, %v3691_v39 }
0x13f6   :  { %v3692_v41 = vadd.f32 1.4214138, %v3690_v36 }
0x13f7   :  { %v3695_v35 = vmul.f32 %v4607_v40, %v3693_v45 }
0x13f8   :  { %v3694_v47 = vmul.f32 %v4609_v58, %v3692_v41 }
0x13f9   :  { %v3697_v48 = vadd.f32 -0.28449672, %v3695_v35 }
0x13fa   :  { %v3696_v55 = vadd.f32 -0.28449672, %v3694_v47 }
0x13fb   :  { %v3699_v50 = vmul.f32 %v4607_v40, %v3697_v48 }
0x13fc   :  { %v3698_v49 = vmul.f32 %v4609_v58, %v3696_v55 }
0x13fd   :  { %v3701_v46 = vadd.f32 0.2548296, %v3699_v50 }
0x13fe   :  { %v3700_v56 = vadd.f32 0.2548296, %v3698_v49 }
0x13ff   :  { %v3703_v53 = vmul.f32 %v4607_v40, %v3701_v46 }
0x1400   :  { %v3702_v61 = vmul.f32 %v4609_v58, %v3700_v56  ;;  %v3999_v58 = vld [vmem:[#allocation2 + $0x208] ss:$0 sm:$0xff] }
0x1401   :  { %v3713_v63 = vmul.f32 %v4611_v60, %v3703_v53 }
0x1402   :  { %v3712_v0 = vmul.f32 %v4613_v62, %v3702_v61 }
0x1403   :  { %v3715_v1 = vsub.f32 1.0, %v3713_v63 }
0x1404   :  { %v3714_v3 = vsub.f32 1.0, %v3712_v0 }
0x1405   :  { %v3717_v4 = vmul.f32 %v3715_v1, %v3675_v2 }
0x1406   :  { %v3716_v7 = vmul.f32 %v3714_v3, %v3674_v5  ;;  %v4001_v3 = vld [vmem:[#allocation2 + $0x48] ss:$0 sm:$0xff] }
0x1407   :  { %v3719_v8 = vadd.f32 1.0, %v3717_v4 }
0x1408   :  { %v3718_v11 = vadd.f32 1.0, %v3716_v7 }
0x1409   :  { %v3721_v13 = vmul.f32 %v3719_v8, %v3669_v10  ;;  %v4002_v8 = vld [vmem:[#allocation2 + $0x50] ss:$0 sm:$0xff] }
0x140a   :  { %v3720_v12 = vmul.f32 %v3718_v11, %v3668_v9 }
0x140c   :  { %4410 = vmatprep.mubr.msk.f32.mxu0 %vm1876_vm11, %v3720_v12 }
0x140d   :  { %4411 = vmatmul.mubr.msk.f32.vlgmr.msra.gmra.mrb[34].mxu0 %vm1876_vm11, %v3721_v13 }
0x14e0   :  { %v4412_v15 = vpop.f32.mrb[34].mxu0 }
0x14e1   :  { %v3813_v17 = vadd.f32 %v4412_v15, %v3996_v14  ;;  %v3807_v18 = vpop.f32.mrb[35].mxu0 }
0x14e2   :  { %v3808_v19 = vadd.f32 %v3996_v14, %v3807_v18 }
0x14e3   :  { %v3817_v20 = vadd.f32 %v3813_v17, %v5167_v16 }
0x14e4   :  { %v3816_v54 = vadd.f32 %v3808_v19, %v5163_v6 }
0x14e5   :  { %v3823_v21 = vsel %vm145_vm3, %v3817_v20, 0.0 }
0x14e6   :  { %3824 = vadd.xlane.f32.xlu0 %v3823_v21  ;;  %v3820_v22 = vsel %vm145_vm3, %v3816_v54, 0.0 }
0x14e7   :  { %3821 = vadd.xlane.f32.xlu1 %v3820_v22 }
0x1573   :  { %v3825_v59 = vpop.xlane.xlu0 %3824 }
0x1574   :  { %v3827_v57 = vmul.f32 0.03125, %v3825_v59  ;;  %v3822_v23 = vpop.xlane.xlu1 %3821 }
0x1575   :  { %v3826_v38 = vmul.f32 0.03125, %v3822_v23 }
0x1576   :  { %v3829_v42 = vsub.f32 %v3817_v20, %v3827_v57 }
0x1577   :  { %v3828_v24 = vsub.f32 %v3816_v54, %v3826_v38 }
0x1578   :  { %v3831_v25 = vmul.f32 %v3829_v42, %v3829_v42 }
0x1579   :  { %v3830_v26 = vmul.f32 %v3828_v24, %v3828_v24 }
0x157a   :  { %v3835_v27 = vsel %vm145_vm3, %v3831_v25, 0.0 }
0x157b   :  { %3836 = vadd.xlane.f32.xlu0 %v3835_v27  ;;  %v3832_v16 = vsel %vm145_vm3, %v3830_v26, 0.0 }
0x157c   :  { %3833 = vadd.xlane.f32.xlu1 %v3832_v16 }
0x1608   :  { %v3837_v6 = vpop.xlane.xlu0 %3836 }
0x1609   :  { %v3839_v28 = vmul.f32 0.03125, %v3837_v6  ;;  %v3834_v31 = vpop.xlane.xlu1 %3833 }
0x160a   :  { %v3838_v32 = vmul.f32 0.03125, %v3834_v31 }
0x160b   :  { %v3841_v33 = vadd.f32 1e-05, %v3839_v28 }
0x160c   :  { %v3840_v40 = vadd.f32 1e-05, %v3838_v32 }
0x160d   :  { %4614 = vrsqrt.f32 %v3841_v33 }
0x160e   :  { %4616 = vrsqrt.f32 %v3840_v40 }
0x1617   :  { %v4615_v51 = vpop.eup %4614 }
0x1618   :  { %v4617_v43 = vpop.eup %4616  ;;  %v3845_v30 = vmul.f32 %v4615_v51, %v3829_v42 }
0x1619   :  { %v3844_v34 = vmul.f32 %v4617_v43, %v3828_v24 }
0x161a   :  { %v3851_v44 = vmul.f32 %v3999_v58, %v3845_v30 }
0x161b   :  { %v3850_v37 = vmul.f32 %v3999_v58, %v3844_v34 }
0x161c   :  { %v3857_v39 = vadd.f32 %v4000_v29, %v3851_v44 }
0x161d   :  { %v3856_v52 = vadd.f32 %v4000_v29, %v3850_v37 }
0x161e   :  { %v3863_v36 = vsel %vm145_vm3, %v3857_v39, 0.0 }
0x161f   :  { %3864 = vadd.xlane.f32.xlu0 %v3863_v36  ;;  %v3860_v45 = vsel %vm145_vm3, %v3856_v52, 0.0 }
0x1620   :  { %3861 = vadd.xlane.f32.xlu1 %v3860_v45 }
0x16ac   :  { %v3865_v41 = vpop.xlane.xlu0 %3864 }
0x16ad   :  { %v3867_v35 = vmul.f32 0.03125, %v3865_v41  ;;  %v3862_v47 = vpop.xlane.xlu1 %3861 }
0x16ae   :  { %v3866_v48 = vmul.f32 0.03125, %v3862_v47 }
0x16af   :  { %v3869_v55 = vsub.f32 %v3857_v39, %v3867_v35 }
0x16b0   :  { %v3868_v50 = vsub.f32 %v3856_v52, %v3866_v48 }
0x16b1   :  { %v3871_v49 = vmul.f32 %v3869_v55, %v3869_v55 }
0x16b2   :  { %v3870_v46 = vmul.f32 %v3868_v50, %v3868_v50 }
0x16b3   :  { %v3875_v56 = vsel %vm145_vm3, %v3871_v49, 0.0 }
0x16b4   :  { %3876 = vadd.xlane.f32.xlu0 %v3875_v56  ;;  %v3872_v53 = vsel %vm145_vm3, %v3870_v46, 0.0 }
0x16b5   :  { %3873 = vadd.xlane.f32.xlu1 %v3872_v53 }
0x1741   :  { %v3877_v60 = vpop.xlane.xlu0 %3876 }
0x1742   :  { %v3879_v61 = vmul.f32 0.03125, %v3877_v60  ;;  %v3874_v62 = vpop.xlane.xlu1 %3873 }
0x1743   :  { %v3878_v63 = vmul.f32 0.03125, %v3874_v62 }
0x1744   :  { %v3881_v0 = vadd.f32 1e-05, %v3879_v61 }
0x1745   :  { %v3880_v1 = vadd.f32 1e-05, %v3878_v63 }
0x1746   :  { %4618 = vrsqrt.f32 %v3881_v0 }
0x1747   :  { %4620 = vrsqrt.f32 %v3880_v1 }
0x1750   :  { %v4619_v2 = vpop.eup %4618 }
0x1751   :  { %v4621_v4 = vpop.eup %4620  ;;  %v3885_v5 = vmul.f32 %v4619_v2, %v3869_v55 }
0x1752   :  { %v3884_v7 = vmul.f32 %v4621_v4, %v3868_v50 }
0x1753   :  { %v3891_v9 = vmul.f32 %v4001_v3, %v3885_v5 }
0x1754   :  { %v3890_v11 = vmul.f32 %v4001_v3, %v3884_v7 }
0x1755   :  { %v3897_v10 = vadd.f32 %v4002_v8, %v3891_v9 }
0x1756   :  { %v3896_v12 = vadd.f32 %v4002_v8, %v3890_v11 }
0x1757   :  { %3899 = vst.msk [vmem:[#allocation5 + $0x8] sm:$0xff] %vm145_vm3, %v3897_v10 }
0x1758   :  { %3898 = vst.msk [vmem:[#allocation5] sm:$0xff] %vm145_vm3, %v3896_v12 }
0x1759   :  { %4655 = shalt.err (!%p4652_p12)
}
0x175a   :  { %s4656_s9 = scalar_lea.hbm %s5204_s2, 256 }
0x175b   :  { %p4657_p13 = scmp.ne.s32.totalorder %s5204_s2, %s4656_s9  ;;  %p4660_p0 = scmp.lt.u32.totalorder %s4656_s9, %s5204_s2 }
0x175d   :  { %p4662_p1 = pnand %p4660_p0, %p4657_p13 }
0x175f   :  { %4665 = shalt.err (!%p4662_p1)
}
0x1760   :  { %3911 = dma.vmem_to_hbm [thread:$0]  %s3906_s5, 256, %s5204_s2, [#allocation4], %s4671_s19, %s4671_s19, %s4672_s20  }
0x1761   :  { %4668 = dma.done.wait [#allocation4], 256  }
0x1762   :  { %4669 = vsyncadd [#allocation4], 4294967040 }
0x1763   :  { %3915 = vsyncpa [#allocation3], 1 }
0x1764   :  { %3916 = vsyncpa [#allocation4], 1 }

</bundles_post_ra>
